<compile_context>
chip_gen: v5e
topology: v5e:2x2
jax: 0.10.0
libtpu: 0.0.40
codegen_flags: <defaults>
</compile_context>

<pallas_src>
import jax
import jax.numpy as jnp
from jax import lax
from jax.experimental import pallas as pl
from jax.experimental.pallas import tpu as pltpu

# ---- module hyperparameters (Decoder.__init__) ----
VOC_SIZE = 64
LATENT_DIM = 16
EMB_DIM = 32
HID_DIM = 32
N_LAYER = 1          # single-layer GRU (config.use_lstm = False)
DROPOUT = 0.0        # identity dropout -> deterministic forward
WEATT_TYPE = "none"  # -> ToVocab = nn.Linear(emb_dim, voc_size)
B, T = 2, 8          # batch, helper sequence length

TWO_E = 2 * EMB_DIM
H3 = 3 * HID_DIM     # packed gate width, gate order [r | z | n] (PyTorch)

# ---- row offsets of the single packed weight slab (lane width = 3H = 96) ----
# All section starts are multiples of 8 so every static slice is sublane-aligned.
R_WIH_C = 0                      # (E, 3H)  W_ih(cond half)^T
R_WIH_S = R_WIH_C + EMB_DIM      # (E, 3H)  (W_ih(emb)+W_ih(cond))^T -> step-0 gates
R_WHH   = R_WIH_S + EMB_DIM      # (H, 3H)  W_hh^T
R_EMBIH = R_WHH + HID_DIM        # (V, 3H)  Embedding @ W_ih(emb half)^T (precomputed)
R_W1    = R_EMBIH + VOC_SIZE     # (L, E)   toInit layer-1 weight^T (lane-padded)
R_W2    = R_W1 + LATENT_DIM      # (E, E)   toInit layer-2 weight^T
R_WC    = R_W2 + EMB_DIM         # (H, E)   W_c^T
R_WV    = R_WC + HID_DIM         # (E, V)   ToVocab^T
R_BIAS  = R_WV + EMB_DIM         # 8 bias rows: b1, b2, bih_fold, b_hn, bc, bv, 0, 0
N_SLAB_ROWS = R_BIAS + 8         # 280


def _make_decoder_kernel(Bn, Tn):
    """GRU recurrence + projections for static (B, T)."""
    H = HID_DIM

    def kernel(helper_ref, latent_ref, w_ref, out_ref, ig_ref, hs_ref):
        # helper_ref : SMEM (B*T,) int32 token ids, row-major (b*T + t)
        # latent_ref : VMEM (B, L) f32
        # w_ref      : VMEM (N_SLAB_ROWS, 3H) packed weight slab
        # out_ref    : VMEM (B, T, V) logits
        # ig_ref     : VMEM scratch (T*B, 3H) embedding-side gate pre-activations
        # hs_ref     : VMEM scratch (B*T, H) hidden states, batch-major

        # --- static views into the packed slab (one input DMA for all weights) ---
        w1t   = w_ref[R_W1:R_W1 + LATENT_DIM, :EMB_DIM]
        w2t   = w_ref[R_W2:R_W2 + EMB_DIM, :EMB_DIM]
        wih_c = w_ref[R_WIH_C:R_WIH_C + EMB_DIM, :]
        wih_s = w_ref[R_WIH_S:R_WIH_S + EMB_DIM, :]
        whh   = w_ref[R_WHH:R_WHH + H, :]
        wct   = w_ref[R_WC:R_WC + H, :EMB_DIM]
        wvt   = w_ref[R_WV:R_WV + EMB_DIM, :VOC_SIZE]
        b1    = w_ref[R_BIAS + 0:R_BIAS + 1, :EMB_DIM]
        b2    = w_ref[R_BIAS + 1:R_BIAS + 2, :EMB_DIM]
        bih_f = w_ref[R_BIAS + 2:R_BIAS + 3, :]                              # (1, 3H)
        bhn_b = jnp.broadcast_to(w_ref[R_BIAS + 3:R_BIAS + 4, :H], (Bn, H))  # hoisted
        bc    = w_ref[R_BIAS + 4:R_BIAS + 5, :EMB_DIM]
        bv    = w_ref[R_BIAS + 5:R_BIAS + 6, :VOC_SIZE]

        # --- embedding-side input gates: pure row gather of the precomputed
        #     (Embedding @ W_ih_emb^T) table -> no in-kernel embedding matmul ---
        for t in range(Tn):
            for b in range(Bn):
                tok = helper_ref[b * Tn + t]
                row = t * Bn + b
                ig_ref[row:row + 1, :] = w_ref[pl.ds(R_EMBIH + tok, 1), :]

        # --- toInit MLP + conditioned gate terms (computed ONCE for all steps) ---
        lat = latent_ref[...]
        h1 = jnp.maximum(
            jnp.dot(lat, w1t, preferred_element_type=jnp.float32) + b1, 0.0)
        init_input = jnp.dot(h1, w2t, preferred_element_type=jnp.float32) + b2   # (B, E)
        ig_cond = jnp.dot(init_input, wih_c,
                          preferred_element_type=jnp.float32) + bih_f            # (B, 3H)
        ig0 = jnp.dot(init_input, wih_s,
                      preferred_element_type=jnp.float32) + bih_f                # (B, 3H)

        # Per-step input gates: independent of the recurrence -> off the serial chain.
        ig_steps = [ig_ref[t * Bn:(t + 1) * Bn, :] + ig_cond for t in range(Tn)]

        # --- step 0 (h_0): zero hidden state => hidden pre-activations are zero ---
        r = jax.nn.sigmoid(ig0[:, :H])
        z = jax.nn.sigmoid(ig0[:, H:2 * H])
        n = jnp.tanh(ig0[:, 2 * H:] + r * bhn_b)
        h = n - z * n

        # --- fully-unrolled recurrence: ONE fused (H, 3H) matmul per step ---
        # TODO(synk): keep whh resident in the MXU staging registers via
        # pltpu.matmul_push_rhs / matmul_acc_lhs / matmul_pop across the 8 steps.
        for t in range(Tn):
            hg = jnp.dot(h, whh, preferred_element_type=jnp.float32)       # (B, 3H)
            ig = ig_steps[t]
            r = jax.nn.sigmoid(ig[:, :H] + hg[:, :H])
            z = jax.nn.sigmoid(ig[:, H:2 * H] + hg[:, H:2 * H])
            n = jnp.tanh(ig[:, 2 * H:] + r * (hg[:, 2 * H:] + bhn_b))
            h = n + z * (h - n)
            for b in range(Bn):                          # batch-major scratch rows
                rr = b * Tn + t
                hs_ref[rr:rr + 1, :] = h[b:b + 1, :]

        # --- projections hoisted out of the recurrence (two batched matmuls) ---
        h_all = hs_ref[...]                                                 # (B*T, H)
        final = jnp.tanh(
            jnp.dot(h_all, wct, preferred_element_type=jnp.float32) + bc)   # (B*T, E)
        logits = jnp.dot(final, wvt,
                         preferred_element_type=jnp.float32) + bv           # (B*T, V)
        for b in range(Bn):
            out_ref[b, :, :] = logits[b * Tn:(b + 1) * Tn, :]

    return kernel


def make_params(key):
    keys = jax.random.split(key, 12)
    s = 0.1
    return {
        # Embedding(voc_size, emb_dim)
        "embedding": s * jax.random.normal(keys[0], (VOC_SIZE, EMB_DIM), jnp.float32),
        # toInit: Linear(latent, emb) -> ReLU -> Linear(emb, emb)   (weights are (out, in))
        "toInit_w1": s * jax.random.normal(keys[1], (EMB_DIM, LATENT_DIM), jnp.float32),
        "toInit_b1": s * jax.random.normal(keys[2], (EMB_DIM,), jnp.float32),
        "toInit_w2": s * jax.random.normal(keys[3], (EMB_DIM, EMB_DIM), jnp.float32),
        "toInit_b2": s * jax.random.normal(keys[4], (EMB_DIM,), jnp.float32),
        # GRU(input=2*emb, hidden=hid, layers=1); gates ordered [r, z, n]
        "gru_wih": s * jax.random.normal(keys[5], (3, HID_DIM, 2 * EMB_DIM), jnp.float32),
        "gru_whh": s * jax.random.normal(keys[6], (3, HID_DIM, HID_DIM), jnp.float32),
        "gru_bih": s * jax.random.normal(keys[7], (3, HID_DIM), jnp.float32),
        "gru_bhh": s * jax.random.normal(keys[8], (3, HID_DIM), jnp.float32),
        # W_c: Linear(hid, emb)
        "wc": s * jax.random.normal(keys[9], (EMB_DIM, HID_DIM), jnp.float32),
        "bc": s * jax.random.normal(keys[10], (EMB_DIM,), jnp.float32),
        # ToVocab: Linear(emb, voc)
        "wv": s * jax.random.normal(keys[11], (VOC_SIZE, EMB_DIM), jnp.float32),
        "bv": jnp.zeros((VOC_SIZE,), jnp.float32),
    }


def pack_params(params):
    """One-time weight packing into a single (N_SLAB_ROWS, 3H) slab."""
    f32 = jnp.float32
    wih = params["gru_wih"].reshape(H3, TWO_E)            # (3H, 2E), rows [r,z,n]
    wih_e_t = wih[:, :EMB_DIM].T                          # (E, 3H) embedding half
    wih_c_t = wih[:, EMB_DIM:].T                          # (E, 3H) conditioning half
    wih_s_t = wih_e_t + wih_c_t                           # step-0 input = cat([init, init])
    whh_t = params["gru_whh"].reshape(H3, HID_DIM).T      # (H, 3H)
    # Embedding is fixed -> precompute its input-gate contribution once.
    emb_ih = jnp.dot(params["embedding"], wih_e_t,
                     precision=jax.lax.Precision.HIGHEST)  # (V, 3H)

    bih = params["gru_bih"].reshape(H3)
    bhh = params["gru_bhh"].reshape(H3)
    # b_hr / b_hz commute past the hidden matmul -> fold into the input bias.
    bih_fold = bih + jnp.concatenate(
        [bhh[:2 * HID_DIM], jnp.zeros((HID_DIM,), f32)])
    bhn = bhh[2 * HID_DIM:]

    def pad_cols(m):
        return jnp.pad(m, ((0, 0), (0, H3 - m.shape[1])))

    def pad_row(v):
        return jnp.pad(v, (0, H3 - v.shape[0]))[None, :]

    bias_rows = jnp.concatenate([
        pad_row(params["toInit_b1"]),    # R_BIAS + 0
        pad_row(params["toInit_b2"]),    # R_BIAS + 1
        bih_fold[None, :],               # R_BIAS + 2
        pad_row(bhn),                    # R_BIAS + 3
        pad_row(params["bc"]),           # R_BIAS + 4
        pad_row(params["bv"]),           # R_BIAS + 5
        jnp.zeros((2, H3), f32),
    ], axis=0)

    slab = jnp.concatenate([
        wih_c_t, wih_s_t, whh_t, emb_ih,
        pad_cols(params["toInit_w1"].T),
        pad_cols(params["toInit_w2"].T),
        pad_cols(params["wc"].T),
        pad_cols(params["wv"].T),
        bias_rows,
    ], axis=0).astype(f32)
    assert slab.shape == (N_SLAB_ROWS, H3), slab.shape
    return slab


def decoder_forward(w_slab, helper, latent_vector):
    """helper: (B, T) int32; latent_vector: (B, latent_dim) -> (B, T, V) logits."""
    Bn, Tn = helper.shape
    helper_flat = helper.reshape(Bn * Tn).astype(jnp.int32)
    smem = pl.BlockSpec(memory_space=pltpu.MemorySpace.SMEM)
    vmem = pl.BlockSpec(memory_space=pltpu.MemorySpace.VMEM)
    return pl.pallas_call(
        _make_decoder_kernel(Bn, Tn),
        out_shape=jax.ShapeDtypeStruct((Bn, Tn, VOC_SIZE), jnp.float32),
        in_specs=[smem, vmem, vmem],
        out_specs=vmem,
        scratch_shapes=[
            pltpu.VMEM((Tn * Bn, H3), jnp.float32),       # gathered input gates (time-major)
            pltpu.VMEM((Bn * Tn, HID_DIM), jnp.float32),  # hidden states (batch-major)
        ],
    )(helper_flat, latent_vector.astype(jnp.float32), w_slab)


def decoder_forward_ref(params, helper, latent_vector):
    """Pure-JAX reference of the same forward pass (correctness check)."""
    Bn, Tn = helper.shape
    h1 = jnp.maximum(latent_vector @ params["toInit_w1"].T + params["toInit_b1"], 0.0)
    init_input = h1 @ params["toInit_w2"].T + params["toInit_b2"]

    helper_emb = jnp.transpose(params["embedding"][helper], (1, 0, 2))
    cond = jnp.broadcast_to(init_input[None], (Tn, Bn, EMB_DIM))
    x_main = jnp.concatenate([helper_emb, cond], axis=2)
    x0 = jnp.concatenate([init_input, init_input], axis=1)[None]
    x = jnp.concatenate([x0, x_main], axis=0)

    wih_t = jnp.transpose(params["gru_wih"], (0, 2, 1))
    whh_t = jnp.transpose(params["gru_whh"], (0, 2, 1))
    bih = params["gru_bih"][:, None, :]
    bhh = params["gru_bhh"][:, None, :]

    def cell(h, x_t):
        i_r = x_t @ wih_t[0] + bih[0]
        i_z = x_t @ wih_t[1] + bih[1]
        i_n = x_t @ wih_t[2] + bih[2]
        h_r = h @ whh_t[0] + bhh[0]
        h_z = h @ whh_t[1] + bhh[1]
        h_n = h @ whh_t[2] + bhh[2]
        r = jax.nn.sigmoid(i_r + h_r)
        z = jax.nn.sigmoid(i_z + h_z)
        n = jnp.tanh(i_n + r * h_n)
        h_new = (1.0 - z) * n + z * h
        return h_new, h_new

    h_init = jnp.zeros((Bn, HID_DIM), jnp.float32)
    _, hs = lax.scan(cell, h_init, x)       # (T+1, B, H)
    outputs = hs[1:]                        # (T, B, H)
    final = jnp.tanh(outputs @ params["wc"].T + params["bc"])
    logits = final @ params["wv"].T + params["bv"]
    return jnp.transpose(logits, (1, 0, 2))


if __name__ == "__main__":
    key = jax.random.PRNGKey(0)
    k_p, k_h, k_z = jax.random.split(key, 3)
    params = make_params(k_p)
    helper = jax.random.randint(k_h, (B, T), 0, VOC_SIZE, dtype=jnp.int32)
    latent = jax.random.normal(k_z, (B, LATENT_DIM), jnp.float32)

    w_slab = jax.block_until_ready(pack_params(params))  # one-time packing, outside forward
    fwd = jax.jit(decoder_forward)
    logits = jax.block_until_ready(fwd(w_slab, helper, latent))
    ref = jax.block_until_ready(decoder_forward_ref(params, helper, latent))

    assert logits.shape == (B, T, VOC_SIZE), logits.shape
    assert jnp.allclose(logits, ref, atol=1e-4, rtol=1e-4), (
        float(jnp.max(jnp.abs(logits - ref))))
    print("KERNEL_OK")
</pallas_src>

<mosaic_0001>
module attributes {stable_mosaic.version = 11 : i64} {
  func.func @kernel(%arg0: memref<16xi32, #tpu.memory_space<smem>>, %arg1: memref<2x16xf32, #tpu.memory_space<vmem>>, %arg2: memref<280x96xf32, #tpu.memory_space<vmem>>, %arg3: memref<2x8x64xf32, #tpu.memory_space<vmem>>, %arg4: memref<16x96xf32, #tpu.memory_space<vmem>>, %arg5: memref<16x32xf32, #tpu.memory_space<vmem>>) attributes {dimension_semantics = [], scalar_prefetch = 0 : i64, scratch_operands = 2 : i64, tpu.core_type = #tpu.core_type<tc>} {
    %c160 = arith.constant 160 : index
    %c0 = arith.constant 0 : index
    %0 = vector.load %arg2[%c160, %c0] : memref<280x96xf32, #tpu.memory_space<vmem>>, vector<16x32xf32>
    %c176 = arith.constant 176 : index
    %c0_0 = arith.constant 0 : index
    %1 = vector.load %arg2[%c176, %c0_0] : memref<280x96xf32, #tpu.memory_space<vmem>>, vector<32x32xf32>
    %c0_1 = arith.constant 0 : index
    %c0_2 = arith.constant 0 : index
    %2 = vector.load %arg2[%c0_1, %c0_2] : memref<280x96xf32, #tpu.memory_space<vmem>>, vector<32x96xf32>
    %c32 = arith.constant 32 : index
    %c0_3 = arith.constant 0 : index
    %3 = vector.load %arg2[%c32, %c0_3] : memref<280x96xf32, #tpu.memory_space<vmem>>, vector<32x96xf32>
    %c64 = arith.constant 64 : index
    %c0_4 = arith.constant 0 : index
    %4 = vector.load %arg2[%c64, %c0_4] : memref<280x96xf32, #tpu.memory_space<vmem>>, vector<32x96xf32>
    %c208 = arith.constant 208 : index
    %c0_5 = arith.constant 0 : index
    %5 = vector.load %arg2[%c208, %c0_5] : memref<280x96xf32, #tpu.memory_space<vmem>>, vector<32x32xf32>
    %c240 = arith.constant 240 : index
    %c0_6 = arith.constant 0 : index
    %6 = vector.load %arg2[%c240, %c0_6] : memref<280x96xf32, #tpu.memory_space<vmem>>, vector<32x64xf32>
    %c272 = arith.constant 272 : index
    %c0_7 = arith.constant 0 : index
    %7 = vector.load %arg2[%c272, %c0_7] : memref<280x96xf32, #tpu.memory_space<vmem>>, vector<1x32xf32>
    %c273 = arith.constant 273 : index
    %c0_8 = arith.constant 0 : index
    %8 = vector.load %arg2[%c273, %c0_8] : memref<280x96xf32, #tpu.memory_space<vmem>>, vector<1x32xf32>
    %c274 = arith.constant 274 : index
    %c0_9 = arith.constant 0 : index
    %9 = vector.load %arg2[%c274, %c0_9] : memref<280x96xf32, #tpu.memory_space<vmem>>, vector<1x96xf32>
    %c275 = arith.constant 275 : index
    %c0_10 = arith.constant 0 : index
    %10 = vector.load %arg2[%c275, %c0_10] : memref<280x96xf32, #tpu.memory_space<vmem>>, vector<1x32xf32>
    %11 = vector.shape_cast %10 : vector<1x32xf32> to vector<1x32xf32>
    %12 = vector.broadcast %11 : vector<1x32xf32> to vector<2x32xf32>
    %c276 = arith.constant 276 : index
    %c0_11 = arith.constant 0 : index
    %13 = vector.load %arg2[%c276, %c0_11] : memref<280x96xf32, #tpu.memory_space<vmem>>, vector<1x32xf32>
    %c277 = arith.constant 277 : index
    %c0_12 = arith.constant 0 : index
    %14 = vector.load %arg2[%c277, %c0_12] : memref<280x96xf32, #tpu.memory_space<vmem>>, vector<1x64xf32>
    %c0_13 = arith.constant 0 : index
    %15 = memref.load %arg0[%c0_13] : memref<16xi32, #tpu.memory_space<smem>>
    %c96_i32 = arith.constant 96 : i32
    %16 = arith.addi %c96_i32, %15 : i32
    %17 = arith.index_cast %16 : i32 to index
    %c0_14 = arith.constant 0 : index
    %18 = vector.load %arg2[%17, %c0_14] : memref<280x96xf32, #tpu.memory_space<vmem>>, vector<1x96xf32>
    %c0_15 = arith.constant 0 : index
    %c0_16 = arith.constant 0 : index
    %19 = vector.load %arg4[%c0_15, %c0_16] : memref<16x96xf32, #tpu.memory_space<vmem>>, vector<1x96xf32>
    tpu.vector_store %arg4[%c0_15, %c0_16], %18 {strides = array<i32>} : memref<16x96xf32, #tpu.memory_space<vmem>>, vector<1x96xf32>,
    %c8 = arith.constant 8 : index
    %20 = memref.load %arg0[%c8] : memref<16xi32, #tpu.memory_space<smem>>
    %c96_i32_17 = arith.constant 96 : i32
    %21 = arith.addi %c96_i32_17, %20 : i32
    %22 = arith.index_cast %21 : i32 to index
    %c0_18 = arith.constant 0 : index
    %23 = vector.load %arg2[%22, %c0_18] : memref<280x96xf32, #tpu.memory_space<vmem>>, vector<1x96xf32>
    %c1 = arith.constant 1 : index
    %c0_19 = arith.constant 0 : index
    %24 = vector.load %arg4[%c1, %c0_19] : memref<16x96xf32, #tpu.memory_space<vmem>>, vector<1x96xf32>
    tpu.vector_store %arg4[%c1, %c0_19], %23 {strides = array<i32>} : memref<16x96xf32, #tpu.memory_space<vmem>>, vector<1x96xf32>,
    %c1_20 = arith.constant 1 : index
    %25 = memref.load %arg0[%c1_20] : memref<16xi32, #tpu.memory_space<smem>>
    %c96_i32_21 = arith.constant 96 : i32
    %26 = arith.addi %c96_i32_21, %25 : i32
    %27 = arith.index_cast %26 : i32 to index
    %c0_22 = arith.constant 0 : index
    %28 = vector.load %arg2[%27, %c0_22] : memref<280x96xf32, #tpu.memory_space<vmem>>, vector<1x96xf32>
    %c2 = arith.constant 2 : index
    %c0_23 = arith.constant 0 : index
    %29 = vector.load %arg4[%c2, %c0_23] : memref<16x96xf32, #tpu.memory_space<vmem>>, vector<1x96xf32>
    tpu.vector_store %arg4[%c2, %c0_23], %28 {strides = array<i32>} : memref<16x96xf32, #tpu.memory_space<vmem>>, vector<1x96xf32>,
    %c9 = arith.constant 9 : index
    %30 = memref.load %arg0[%c9] : memref<16xi32, #tpu.memory_space<smem>>
    %c96_i32_24 = arith.constant 96 : i32
    %31 = arith.addi %c96_i32_24, %30 : i32
    %32 = arith.index_cast %31 : i32 to index
    %c0_25 = arith.constant 0 : index
    %33 = vector.load %arg2[%32, %c0_25] : memref<280x96xf32, #tpu.memory_space<vmem>>, vector<1x96xf32>
    %c3 = arith.constant 3 : index
    %c0_26 = arith.constant 0 : index
    %34 = vector.load %arg4[%c3, %c0_26] : memref<16x96xf32, #tpu.memory_space<vmem>>, vector<1x96xf32>
    tpu.vector_store %arg4[%c3, %c0_26], %33 {strides = array<i32>} : memref<16x96xf32, #tpu.memory_space<vmem>>, vector<1x96xf32>,
    %c2_27 = arith.constant 2 : index
    %35 = memref.load %arg0[%c2_27] : memref<16xi32, #tpu.memory_space<smem>>
    %c96_i32_28 = arith.constant 96 : i32
    %36 = arith.addi %c96_i32_28, %35 : i32
    %37 = arith.index_cast %36 : i32 to index
    %c0_29 = arith.constant 0 : index
    %38 = vector.load %arg2[%37, %c0_29] : memref<280x96xf32, #tpu.memory_space<vmem>>, vector<1x96xf32>
    %c4 = arith.constant 4 : index
    %c0_30 = arith.constant 0 : index
    %39 = vector.load %arg4[%c4, %c0_30] : memref<16x96xf32, #tpu.memory_space<vmem>>, vector<1x96xf32>
    tpu.vector_store %arg4[%c4, %c0_30], %38 {strides = array<i32>} : memref<16x96xf32, #tpu.memory_space<vmem>>, vector<1x96xf32>,
    %c10 = arith.constant 10 : index
    %40 = memref.load %arg0[%c10] : memref<16xi32, #tpu.memory_space<smem>>
    %c96_i32_31 = arith.constant 96 : i32
    %41 = arith.addi %c96_i32_31, %40 : i32
    %42 = arith.index_cast %41 : i32 to index
    %c0_32 = arith.constant 0 : index
    %43 = vector.load %arg2[%42, %c0_32] : memref<280x96xf32, #tpu.memory_space<vmem>>, vector<1x96xf32>
    %c5 = arith.constant 5 : index
    %c0_33 = arith.constant 0 : index
    %44 = vector.load %arg4[%c5, %c0_33] : memref<16x96xf32, #tpu.memory_space<vmem>>, vector<1x96xf32>
    tpu.vector_store %arg4[%c5, %c0_33], %43 {strides = array<i32>} : memref<16x96xf32, #tpu.memory_space<vmem>>, vector<1x96xf32>,
    %c3_34 = arith.constant 3 : index
    %45 = memref.load %arg0[%c3_34] : memref<16xi32, #tpu.memory_space<smem>>
    %c96_i32_35 = arith.constant 96 : i32
    %46 = arith.addi %c96_i32_35, %45 : i32
    %47 = arith.index_cast %46 : i32 to index
    %c0_36 = arith.constant 0 : index
    %48 = vector.load %arg2[%47, %c0_36] : memref<280x96xf32, #tpu.memory_space<vmem>>, vector<1x96xf32>
    %c6 = arith.constant 6 : index
    %c0_37 = arith.constant 0 : index
    %49 = vector.load %arg4[%c6, %c0_37] : memref<16x96xf32, #tpu.memory_space<vmem>>, vector<1x96xf32>
    tpu.vector_store %arg4[%c6, %c0_37], %48 {strides = array<i32>} : memref<16x96xf32, #tpu.memory_space<vmem>>, vector<1x96xf32>,
    %c11 = arith.constant 11 : index
    %50 = memref.load %arg0[%c11] : memref<16xi32, #tpu.memory_space<smem>>
    %c96_i32_38 = arith.constant 96 : i32
    %51 = arith.addi %c96_i32_38, %50 : i32
    %52 = arith.index_cast %51 : i32 to index
    %c0_39 = arith.constant 0 : index
    %53 = vector.load %arg2[%52, %c0_39] : memref<280x96xf32, #tpu.memory_space<vmem>>, vector<1x96xf32>
    %c7 = arith.constant 7 : index
    %c0_40 = arith.constant 0 : index
    %54 = vector.load %arg4[%c7, %c0_40] : memref<16x96xf32, #tpu.memory_space<vmem>>, vector<1x96xf32>
    tpu.vector_store %arg4[%c7, %c0_40], %53 {strides = array<i32>} : memref<16x96xf32, #tpu.memory_space<vmem>>, vector<1x96xf32>,
    %c4_41 = arith.constant 4 : index
    %55 = memref.load %arg0[%c4_41] : memref<16xi32, #tpu.memory_space<smem>>
    %c96_i32_42 = arith.constant 96 : i32
    %56 = arith.addi %c96_i32_42, %55 : i32
    %57 = arith.index_cast %56 : i32 to index
    %c0_43 = arith.constant 0 : index
    %58 = vector.load %arg2[%57, %c0_43] : memref<280x96xf32, #tpu.memory_space<vmem>>, vector<1x96xf32>
    %c8_44 = arith.constant 8 : index
    %c0_45 = arith.constant 0 : index
    %59 = vector.load %arg4[%c8_44, %c0_45] : memref<16x96xf32, #tpu.memory_space<vmem>>, vector<1x96xf32>
    tpu.vector_store %arg4[%c8_44, %c0_45], %58 {strides = array<i32>} : memref<16x96xf32, #tpu.memory_space<vmem>>, vector<1x96xf32>,
    %c12 = arith.constant 12 : index
    %60 = memref.load %arg0[%c12] : memref<16xi32, #tpu.memory_space<smem>>
    %c96_i32_46 = arith.constant 96 : i32
    %61 = arith.addi %c96_i32_46, %60 : i32
    %62 = arith.index_cast %61 : i32 to index
    %c0_47 = arith.constant 0 : index
    %63 = vector.load %arg2[%62, %c0_47] : memref<280x96xf32, #tpu.memory_space<vmem>>, vector<1x96xf32>
    %c9_48 = arith.constant 9 : index
    %c0_49 = arith.constant 0 : index
    %64 = vector.load %arg4[%c9_48, %c0_49] : memref<16x96xf32, #tpu.memory_space<vmem>>, vector<1x96xf32>
    tpu.vector_store %arg4[%c9_48, %c0_49], %63 {strides = array<i32>} : memref<16x96xf32, #tpu.memory_space<vmem>>, vector<1x96xf32>,
    %c5_50 = arith.constant 5 : index
    %65 = memref.load %arg0[%c5_50] : memref<16xi32, #tpu.memory_space<smem>>
    %c96_i32_51 = arith.constant 96 : i32
    %66 = arith.addi %c96_i32_51, %65 : i32
    %67 = arith.index_cast %66 : i32 to index
    %c0_52 = arith.constant 0 : index
    %68 = vector.load %arg2[%67, %c0_52] : memref<280x96xf32, #tpu.memory_space<vmem>>, vector<1x96xf32>
    %c10_53 = arith.constant 10 : index
    %c0_54 = arith.constant 0 : index
    %69 = vector.load %arg4[%c10_53, %c0_54] : memref<16x96xf32, #tpu.memory_space<vmem>>, vector<1x96xf32>
    tpu.vector_store %arg4[%c10_53, %c0_54], %68 {strides = array<i32>} : memref<16x96xf32, #tpu.memory_space<vmem>>, vector<1x96xf32>,
    %c13 = arith.constant 13 : index
    %70 = memref.load %arg0[%c13] : memref<16xi32, #tpu.memory_space<smem>>
    %c96_i32_55 = arith.constant 96 : i32
    %71 = arith.addi %c96_i32_55, %70 : i32
    %72 = arith.index_cast %71 : i32 to index
    %c0_56 = arith.constant 0 : index
    %73 = vector.load %arg2[%72, %c0_56] : memref<280x96xf32, #tpu.memory_space<vmem>>, vector<1x96xf32>
    %c11_57 = arith.constant 11 : index
    %c0_58 = arith.constant 0 : index
    %74 = vector.load %arg4[%c11_57, %c0_58] : memref<16x96xf32, #tpu.memory_space<vmem>>, vector<1x96xf32>
    tpu.vector_store %arg4[%c11_57, %c0_58], %73 {strides = array<i32>} : memref<16x96xf32, #tpu.memory_space<vmem>>, vector<1x96xf32>,
    %c6_59 = arith.constant 6 : index
    %75 = memref.load %arg0[%c6_59] : memref<16xi32, #tpu.memory_space<smem>>
    %c96_i32_60 = arith.constant 96 : i32
    %76 = arith.addi %c96_i32_60, %75 : i32
    %77 = arith.index_cast %76 : i32 to index
    %c0_61 = arith.constant 0 : index
    %78 = vector.load %arg2[%77, %c0_61] : memref<280x96xf32, #tpu.memory_space<vmem>>, vector<1x96xf32>
    %c12_62 = arith.constant 12 : index
    %c0_63 = arith.constant 0 : index
    %79 = vector.load %arg4[%c12_62, %c0_63] : memref<16x96xf32, #tpu.memory_space<vmem>>, vector<1x96xf32>
    tpu.vector_store %arg4[%c12_62, %c0_63], %78 {strides = array<i32>} : memref<16x96xf32, #tpu.memory_space<vmem>>, vector<1x96xf32>,
    %c14 = arith.constant 14 : index
    %80 = memref.load %arg0[%c14] : memref<16xi32, #tpu.memory_space<smem>>
    %c96_i32_64 = arith.constant 96 : i32
    %81 = arith.addi %c96_i32_64, %80 : i32
    %82 = arith.index_cast %81 : i32 to index
    %c0_65 = arith.constant 0 : index
    %83 = vector.load %arg2[%82, %c0_65] : memref<280x96xf32, #tpu.memory_space<vmem>>, vector<1x96xf32>
    %c13_66 = arith.constant 13 : index
    %c0_67 = arith.constant 0 : index
    %84 = vector.load %arg4[%c13_66, %c0_67] : memref<16x96xf32, #tpu.memory_space<vmem>>, vector<1x96xf32>
    tpu.vector_store %arg4[%c13_66, %c0_67], %83 {strides = array<i32>} : memref<16x96xf32, #tpu.memory_space<vmem>>, vector<1x96xf32>,
    %c7_68 = arith.constant 7 : index
    %85 = memref.load %arg0[%c7_68] : memref<16xi32, #tpu.memory_space<smem>>
    %c96_i32_69 = arith.constant 96 : i32
    %86 = arith.addi %c96_i32_69, %85 : i32
    %87 = arith.index_cast %86 : i32 to index
    %c0_70 = arith.constant 0 : index
    %88 = vector.load %arg2[%87, %c0_70] : memref<280x96xf32, #tpu.memory_space<vmem>>, vector<1x96xf32>
    %c14_71 = arith.constant 14 : index
    %c0_72 = arith.constant 0 : index
    %89 = vector.load %arg4[%c14_71, %c0_72] : memref<16x96xf32, #tpu.memory_space<vmem>>, vector<1x96xf32>
    tpu.vector_store %arg4[%c14_71, %c0_72], %88 {strides = array<i32>} : memref<16x96xf32, #tpu.memory_space<vmem>>, vector<1x96xf32>,
    %c15 = arith.constant 15 : index
    %90 = memref.load %arg0[%c15] : memref<16xi32, #tpu.memory_space<smem>>
    %c96_i32_73 = arith.constant 96 : i32
    %91 = arith.addi %c96_i32_73, %90 : i32
    %92 = arith.index_cast %91 : i32 to index
    %c0_74 = arith.constant 0 : index
    %93 = vector.load %arg2[%92, %c0_74] : memref<280x96xf32, #tpu.memory_space<vmem>>, vector<1x96xf32>
    %c15_75 = arith.constant 15 : index
    %c0_76 = arith.constant 0 : index
    %94 = vector.load %arg4[%c15_75, %c0_76] : memref<16x96xf32, #tpu.memory_space<vmem>>, vector<1x96xf32>
    tpu.vector_store %arg4[%c15_75, %c0_76], %93 {strides = array<i32>} : memref<16x96xf32, #tpu.memory_space<vmem>>, vector<1x96xf32>,
    %c0_77 = arith.constant 0 : index
    %c0_78 = arith.constant 0 : index
    %95 = vector.load %arg1[%c0_77, %c0_78] : memref<2x16xf32, #tpu.memory_space<vmem>>, vector<2x16xf32>
    %cst = arith.constant dense<0.000000e+00> : vector<2x32xf32>
    %96 = tpu.matmul %95, %0, %cst {dimension_numbers = #tpu.dot_dimension_numbers<[1], [0], [0], [1], [0, 0, 1, 1], [], []>} : vector<2x16xf32>, vector<16x32xf32>, vector<2x32xf32> -> vector<2x32xf32>
    %97 = vector.broadcast %7 : vector<1x32xf32> to vector<2x32xf32>
    %98 = arith.addf %96, %97 : vector<2x32xf32>
    %cst_79 = arith.constant 0.000000e+00 : f32
    %99 = vector.broadcast %cst_79 : f32 to vector<2x32xf32>
    %100 = arith.maximumf %98, %99 : vector<2x32xf32>
    %cst_80 = arith.constant dense<0.000000e+00> : vector<2x32xf32>
    %101 = tpu.matmul %100, %1, %cst_80 {dimension_numbers = #tpu.dot_dimension_numbers<[1], [0], [0], [1], [0, 0, 1, 1], [], []>} : vector<2x32xf32>, vector<32x32xf32>, vector<2x32xf32> -> vector<2x32xf32>
    %102 = vector.broadcast %8 : vector<1x32xf32> to vector<2x32xf32>
    %103 = arith.addf %101, %102 : vector<2x32xf32>
    %cst_81 = arith.constant dense<0.000000e+00> : vector<2x96xf32>
    %104 = tpu.matmul %103, %2, %cst_81 {dimension_numbers = #tpu.dot_dimension_numbers<[1], [0], [0], [1], [0, 0, 1, 1], [], []>} : vector<2x32xf32>, vector<32x96xf32>, vector<2x96xf32> -> vector<2x96xf32>
    %105 = vector.broadcast %9 : vector<1x96xf32> to vector<2x96xf32>
    %106 = arith.addf %104, %105 : vector<2x96xf32>
    %cst_82 = arith.constant dense<0.000000e+00> : vector<2x96xf32>
    %107 = tpu.matmul %103, %3, %cst_82 {dimension_numbers = #tpu.dot_dimension_numbers<[1], [0], [0], [1], [0, 0, 1, 1], [], []>} : vector<2x32xf32>, vector<32x96xf32>, vector<2x96xf32> -> vector<2x96xf32>
    %108 = vector.broadcast %9 : vector<1x96xf32> to vector<2x96xf32>
    %109 = arith.addf %107, %108 : vector<2x96xf32>
    %c0_83 = arith.constant 0 : index
    %c0_84 = arith.constant 0 : index
    %110 = vector.load %arg4[%c0_83, %c0_84] : memref<16x96xf32, #tpu.memory_space<vmem>>, vector<2x96xf32>
    %111 = arith.addf %110, %106 : vector<2x96xf32>
    %c2_85 = arith.constant 2 : index
    %c0_86 = arith.constant 0 : index
    %112 = vector.load %arg4[%c2_85, %c0_86] : memref<16x96xf32, #tpu.memory_space<vmem>>, vector<2x96xf32>
    %113 = arith.addf %112, %106 : vector<2x96xf32>
    %c4_87 = arith.constant 4 : index
    %c0_88 = arith.constant 0 : index
    %114 = vector.load %arg4[%c4_87, %c0_88] : memref<16x96xf32, #tpu.memory_space<vmem>>, vector<2x96xf32>
    %115 = arith.addf %114, %106 : vector<2x96xf32>
    %c6_89 = arith.constant 6 : index
    %c0_90 = arith.constant 0 : index
    %116 = vector.load %arg4[%c6_89, %c0_90] : memref<16x96xf32, #tpu.memory_space<vmem>>, vector<2x96xf32>
    %117 = arith.addf %116, %106 : vector<2x96xf32>
    %c8_91 = arith.constant 8 : index
    %c0_92 = arith.constant 0 : index
    %118 = vector.load %arg4[%c8_91, %c0_92] : memref<16x96xf32, #tpu.memory_space<vmem>>, vector<2x96xf32>
    %119 = arith.addf %118, %106 : vector<2x96xf32>
    %c10_93 = arith.constant 10 : index
    %c0_94 = arith.constant 0 : index
    %120 = vector.load %arg4[%c10_93, %c0_94] : memref<16x96xf32, #tpu.memory_space<vmem>>, vector<2x96xf32>
    %121 = arith.addf %120, %106 : vector<2x96xf32>
    %c12_95 = arith.constant 12 : index
    %c0_96 = arith.constant 0 : index
    %122 = vector.load %arg4[%c12_95, %c0_96] : memref<16x96xf32, #tpu.memory_space<vmem>>, vector<2x96xf32>
    %123 = arith.addf %122, %106 : vector<2x96xf32>
    %c14_97 = arith.constant 14 : index
    %c0_98 = arith.constant 0 : index
    %124 = vector.load %arg4[%c14_97, %c0_98] : memref<16x96xf32, #tpu.memory_space<vmem>>, vector<2x96xf32>
    %125 = arith.addf %124, %106 : vector<2x96xf32>
    %126 = vector.extract_strided_slice %109 {offsets = [0, 0], sizes = [2, 32], strides = [1, 1]} : vector<2x96xf32> to vector<2x32xf32>
    %127 = arith.negf %126 : vector<2x32xf32>
    %128 = math.exp %127 : vector<2x32xf32>
    %cst_99 = arith.constant 1.000000e+00 : f32
    %129 = vector.broadcast %cst_99 : f32 to vector<2x32xf32>
    %130 = arith.addf %129, %128 : vector<2x32xf32>
    %131 = arith.divf %129, %130 : vector<2x32xf32>
    %132 = vector.extract_strided_slice %109 {offsets = [0, 32], sizes = [2, 32], strides = [1, 1]} : vector<2x96xf32> to vector<2x32xf32>
    %133 = arith.negf %132 : vector<2x32xf32>
    %134 = math.exp %133 : vector<2x32xf32>
    %cst_100 = arith.constant 1.000000e+00 : f32
    %135 = vector.broadcast %cst_100 : f32 to vector<2x32xf32>
    %136 = arith.addf %135, %134 : vector<2x32xf32>
    %137 = arith.divf %135, %136 : vector<2x32xf32>
    %138 = vector.extract_strided_slice %109 {offsets = [0, 64], sizes = [2, 32], strides = [1, 1]} : vector<2x96xf32> to vector<2x32xf32>
    %139 = arith.mulf %131, %12 : vector<2x32xf32>
    %140 = arith.addf %138, %139 : vector<2x32xf32>
    %141 = math.tanh %140 : vector<2x32xf32>
    %142 = arith.mulf %137, %141 : vector<2x32xf32>
    %143 = arith.subf %141, %142 : vector<2x32xf32>
    %cst_101 = arith.constant dense<0.000000e+00> : vector<2x96xf32>
    %144 = tpu.matmul %143, %4, %cst_101 {dimension_numbers = #tpu.dot_dimension_numbers<[1], [0], [0], [1], [0, 0, 1, 1], [], []>} : vector<2x32xf32>, vector<32x96xf32>, vector<2x96xf32> -> vector<2x96xf32>
    %145 = vector.extract_strided_slice %111 {offsets = [0, 0], sizes = [2, 32], strides = [1, 1]} : vector<2x96xf32> to vector<2x32xf32>
    %146 = vector.extract_strided_slice %144 {offsets = [0, 0], sizes = [2, 32], strides = [1, 1]} : vector<2x96xf32> to vector<2x32xf32>
    %147 = arith.addf %145, %146 : vector<2x32xf32>
    %148 = arith.negf %147 : vector<2x32xf32>
    %149 = math.exp %148 : vector<2x32xf32>
    %cst_102 = arith.constant 1.000000e+00 : f32
    %150 = vector.broadcast %cst_102 : f32 to vector<2x32xf32>
    %151 = arith.addf %150, %149 : vector<2x32xf32>
    %152 = arith.divf %150, %151 : vector<2x32xf32>
    %153 = vector.extract_strided_slice %111 {offsets = [0, 32], sizes = [2, 32], strides = [1, 1]} : vector<2x96xf32> to vector<2x32xf32>
    %154 = vector.extract_strided_slice %144 {offsets = [0, 32], sizes = [2, 32], strides = [1, 1]} : vector<2x96xf32> to vector<2x32xf32>
    %155 = arith.addf %153, %154 : vector<2x32xf32>
    %156 = arith.negf %155 : vector<2x32xf32>
    %157 = math.exp %156 : vector<2x32xf32>
    %cst_103 = arith.constant 1.000000e+00 : f32
    %158 = vector.broadcast %cst_103 : f32 to vector<2x32xf32>
    %159 = arith.addf %158, %157 : vector<2x32xf32>
    %160 = arith.divf %158, %159 : vector<2x32xf32>
    %161 = vector.extract_strided_slice %111 {offsets = [0, 64], sizes = [2, 32], strides = [1, 1]} : vector<2x96xf32> to vector<2x32xf32>
    %162 = vector.extract_strided_slice %144 {offsets = [0, 64], sizes = [2, 32], strides = [1, 1]} : vector<2x96xf32> to vector<2x32xf32>
    %163 = arith.addf %162, %12 : vector<2x32xf32>
    %164 = arith.mulf %152, %163 : vector<2x32xf32>
    %165 = arith.addf %161, %164 : vector<2x32xf32>
    %166 = math.tanh %165 : vector<2x32xf32>
    %167 = arith.subf %143, %166 : vector<2x32xf32>
    %168 = arith.mulf %160, %167 : vector<2x32xf32>
    %169 = arith.addf %166, %168 : vector<2x32xf32>
    %170 = vector.extract_strided_slice %169 {offsets = [0, 0], sizes = [1, 32], strides = [1, 1]} : vector<2x32xf32> to vector<1x32xf32>
    %c0_104 = arith.constant 0 : index
    %c0_105 = arith.constant 0 : index
    %171 = vector.load %arg5[%c0_104, %c0_105] : memref<16x32xf32, #tpu.memory_space<vmem>>, vector<1x32xf32>
    tpu.vector_store %arg5[%c0_104, %c0_105], %170 {strides = array<i32>} : memref<16x32xf32, #tpu.memory_space<vmem>>, vector<1x32xf32>,
    %172 = vector.extract_strided_slice %169 {offsets = [1, 0], sizes = [1, 32], strides = [1, 1]} : vector<2x32xf32> to vector<1x32xf32>
    %c8_106 = arith.constant 8 : index
    %c0_107 = arith.constant 0 : index
    %173 = vector.load %arg5[%c8_106, %c0_107] : memref<16x32xf32, #tpu.memory_space<vmem>>, vector<1x32xf32>
    tpu.vector_store %arg5[%c8_106, %c0_107], %172 {strides = array<i32>} : memref<16x32xf32, #tpu.memory_space<vmem>>, vector<1x32xf32>,
    %cst_108 = arith.constant dense<0.000000e+00> : vector<2x96xf32>
    %174 = tpu.matmul %169, %4, %cst_108 {dimension_numbers = #tpu.dot_dimension_numbers<[1], [0], [0], [1], [0, 0, 1, 1], [], []>} : vector<2x32xf32>, vector<32x96xf32>, vector<2x96xf32> -> vector<2x96xf32>
    %175 = vector.extract_strided_slice %113 {offsets = [0, 0], sizes = [2, 32], strides = [1, 1]} : vector<2x96xf32> to vector<2x32xf32>
    %176 = vector.extract_strided_slice %174 {offsets = [0, 0], sizes = [2, 32], strides = [1, 1]} : vector<2x96xf32> to vector<2x32xf32>
    %177 = arith.addf %175, %176 : vector<2x32xf32>
    %178 = arith.negf %177 : vector<2x32xf32>
    %179 = math.exp %178 : vector<2x32xf32>
    %cst_109 = arith.constant 1.000000e+00 : f32
    %180 = vector.broadcast %cst_109 : f32 to vector<2x32xf32>
    %181 = arith.addf %180, %179 : vector<2x32xf32>
    %182 = arith.divf %180, %181 : vector<2x32xf32>
    %183 = vector.extract_strided_slice %113 {offsets = [0, 32], sizes = [2, 32], strides = [1, 1]} : vector<2x96xf32> to vector<2x32xf32>
    %184 = vector.extract_strided_slice %174 {offsets = [0, 32], sizes = [2, 32], strides = [1, 1]} : vector<2x96xf32> to vector<2x32xf32>
    %185 = arith.addf %183, %184 : vector<2x32xf32>
    %186 = arith.negf %185 : vector<2x32xf32>
    %187 = math.exp %186 : vector<2x32xf32>
    %cst_110 = arith.constant 1.000000e+00 : f32
    %188 = vector.broadcast %cst_110 : f32 to vector<2x32xf32>
    %189 = arith.addf %188, %187 : vector<2x32xf32>
    %190 = arith.divf %188, %189 : vector<2x32xf32>
    %191 = vector.extract_strided_slice %113 {offsets = [0, 64], sizes = [2, 32], strides = [1, 1]} : vector<2x96xf32> to vector<2x32xf32>
    %192 = vector.extract_strided_slice %174 {offsets = [0, 64], sizes = [2, 32], strides = [1, 1]} : vector<2x96xf32> to vector<2x32xf32>
    %193 = arith.addf %192, %12 : vector<2x32xf32>
    %194 = arith.mulf %182, %193 : vector<2x32xf32>
    %195 = arith.addf %191, %194 : vector<2x32xf32>
    %196 = math.tanh %195 : vector<2x32xf32>
    %197 = arith.subf %169, %196 : vector<2x32xf32>
    %198 = arith.mulf %190, %197 : vector<2x32xf32>
    %199 = arith.addf %196, %198 : vector<2x32xf32>
    %200 = vector.extract_strided_slice %199 {offsets = [0, 0], sizes = [1, 32], strides = [1, 1]} : vector<2x32xf32> to vector<1x32xf32>
    %c1_111 = arith.constant 1 : index
    %c0_112 = arith.constant 0 : index
    %201 = vector.load %arg5[%c1_111, %c0_112] : memref<16x32xf32, #tpu.memory_space<vmem>>, vector<1x32xf32>
    tpu.vector_store %arg5[%c1_111, %c0_112], %200 {strides = array<i32>} : memref<16x32xf32, #tpu.memory_space<vmem>>, vector<1x32xf32>,
    %202 = vector.extract_strided_slice %199 {offsets = [1, 0], sizes = [1, 32], strides = [1, 1]} : vector<2x32xf32> to vector<1x32xf32>
    %c9_113 = arith.constant 9 : index
    %c0_114 = arith.constant 0 : index
    %203 = vector.load %arg5[%c9_113, %c0_114] : memref<16x32xf32, #tpu.memory_space<vmem>>, vector<1x32xf32>
    tpu.vector_store %arg5[%c9_113, %c0_114], %202 {strides = array<i32>} : memref<16x32xf32, #tpu.memory_space<vmem>>, vector<1x32xf32>,
    %cst_115 = arith.constant dense<0.000000e+00> : vector<2x96xf32>
    %204 = tpu.matmul %199, %4, %cst_115 {dimension_numbers = #tpu.dot_dimension_numbers<[1], [0], [0], [1], [0, 0, 1, 1], [], []>} : vector<2x32xf32>, vector<32x96xf32>, vector<2x96xf32> -> vector<2x96xf32>
    %205 = vector.extract_strided_slice %115 {offsets = [0, 0], sizes = [2, 32], strides = [1, 1]} : vector<2x96xf32> to vector<2x32xf32>
    %206 = vector.extract_strided_slice %204 {offsets = [0, 0], sizes = [2, 32], strides = [1, 1]} : vector<2x96xf32> to vector<2x32xf32>
    %207 = arith.addf %205, %206 : vector<2x32xf32>
    %208 = arith.negf %207 : vector<2x32xf32>
    %209 = math.exp %208 : vector<2x32xf32>
    %cst_116 = arith.constant 1.000000e+00 : f32
    %210 = vector.broadcast %cst_116 : f32 to vector<2x32xf32>
    %211 = arith.addf %210, %209 : vector<2x32xf32>
    %212 = arith.divf %210, %211 : vector<2x32xf32>
    %213 = vector.extract_strided_slice %115 {offsets = [0, 32], sizes = [2, 32], strides = [1, 1]} : vector<2x96xf32> to vector<2x32xf32>
    %214 = vector.extract_strided_slice %204 {offsets = [0, 32], sizes = [2, 32], strides = [1, 1]} : vector<2x96xf32> to vector<2x32xf32>
    %215 = arith.addf %213, %214 : vector<2x32xf32>
    %216 = arith.negf %215 : vector<2x32xf32>
    %217 = math.exp %216 : vector<2x32xf32>
    %cst_117 = arith.constant 1.000000e+00 : f32
    %218 = vector.broadcast %cst_117 : f32 to vector<2x32xf32>
    %219 = arith.addf %218, %217 : vector<2x32xf32>
    %220 = arith.divf %218, %219 : vector<2x32xf32>
    %221 = vector.extract_strided_slice %115 {offsets = [0, 64], sizes = [2, 32], strides = [1, 1]} : vector<2x96xf32> to vector<2x32xf32>
    %222 = vector.extract_strided_slice %204 {offsets = [0, 64], sizes = [2, 32], strides = [1, 1]} : vector<2x96xf32> to vector<2x32xf32>
    %223 = arith.addf %222, %12 : vector<2x32xf32>
    %224 = arith.mulf %212, %223 : vector<2x32xf32>
    %225 = arith.addf %221, %224 : vector<2x32xf32>
    %226 = math.tanh %225 : vector<2x32xf32>
    %227 = arith.subf %199, %226 : vector<2x32xf32>
    %228 = arith.mulf %220, %227 : vector<2x32xf32>
    %229 = arith.addf %226, %228 : vector<2x32xf32>
    %230 = vector.extract_strided_slice %229 {offsets = [0, 0], sizes = [1, 32], strides = [1, 1]} : vector<2x32xf32> to vector<1x32xf32>
    %c2_118 = arith.constant 2 : index
    %c0_119 = arith.constant 0 : index
    %231 = vector.load %arg5[%c2_118, %c0_119] : memref<16x32xf32, #tpu.memory_space<vmem>>, vector<1x32xf32>
    tpu.vector_store %arg5[%c2_118, %c0_119], %230 {strides = array<i32>} : memref<16x32xf32, #tpu.memory_space<vmem>>, vector<1x32xf32>,
    %232 = vector.extract_strided_slice %229 {offsets = [1, 0], sizes = [1, 32], strides = [1, 1]} : vector<2x32xf32> to vector<1x32xf32>
    %c10_120 = arith.constant 10 : index
    %c0_121 = arith.constant 0 : index
    %233 = vector.load %arg5[%c10_120, %c0_121] : memref<16x32xf32, #tpu.memory_space<vmem>>, vector<1x32xf32>
    tpu.vector_store %arg5[%c10_120, %c0_121], %232 {strides = array<i32>} : memref<16x32xf32, #tpu.memory_space<vmem>>, vector<1x32xf32>,
    %cst_122 = arith.constant dense<0.000000e+00> : vector<2x96xf32>
    %234 = tpu.matmul %229, %4, %cst_122 {dimension_numbers = #tpu.dot_dimension_numbers<[1], [0], [0], [1], [0, 0, 1, 1], [], []>} : vector<2x32xf32>, vector<32x96xf32>, vector<2x96xf32> -> vector<2x96xf32>
    %235 = vector.extract_strided_slice %117 {offsets = [0, 0], sizes = [2, 32], strides = [1, 1]} : vector<2x96xf32> to vector<2x32xf32>
    %236 = vector.extract_strided_slice %234 {offsets = [0, 0], sizes = [2, 32], strides = [1, 1]} : vector<2x96xf32> to vector<2x32xf32>
    %237 = arith.addf %235, %236 : vector<2x32xf32>
    %238 = arith.negf %237 : vector<2x32xf32>
    %239 = math.exp %238 : vector<2x32xf32>
    %cst_123 = arith.constant 1.000000e+00 : f32
    %240 = vector.broadcast %cst_123 : f32 to vector<2x32xf32>
    %241 = arith.addf %240, %239 : vector<2x32xf32>
    %242 = arith.divf %240, %241 : vector<2x32xf32>
    %243 = vector.extract_strided_slice %117 {offsets = [0, 32], sizes = [2, 32], strides = [1, 1]} : vector<2x96xf32> to vector<2x32xf32>
    %244 = vector.extract_strided_slice %234 {offsets = [0, 32], sizes = [2, 32], strides = [1, 1]} : vector<2x96xf32> to vector<2x32xf32>
    %245 = arith.addf %243, %244 : vector<2x32xf32>
    %246 = arith.negf %245 : vector<2x32xf32>
    %247 = math.exp %246 : vector<2x32xf32>
    %cst_124 = arith.constant 1.000000e+00 : f32
    %248 = vector.broadcast %cst_124 : f32 to vector<2x32xf32>
    %249 = arith.addf %248, %247 : vector<2x32xf32>
    %250 = arith.divf %248, %249 : vector<2x32xf32>
    %251 = vector.extract_strided_slice %117 {offsets = [0, 64], sizes = [2, 32], strides = [1, 1]} : vector<2x96xf32> to vector<2x32xf32>
    %252 = vector.extract_strided_slice %234 {offsets = [0, 64], sizes = [2, 32], strides = [1, 1]} : vector<2x96xf32> to vector<2x32xf32>
    %253 = arith.addf %252, %12 : vector<2x32xf32>
    %254 = arith.mulf %242, %253 : vector<2x32xf32>
    %255 = arith.addf %251, %254 : vector<2x32xf32>
    %256 = math.tanh %255 : vector<2x32xf32>
    %257 = arith.subf %229, %256 : vector<2x32xf32>
    %258 = arith.mulf %250, %257 : vector<2x32xf32>
    %259 = arith.addf %256, %258 : vector<2x32xf32>
    %260 = vector.extract_strided_slice %259 {offsets = [0, 0], sizes = [1, 32], strides = [1, 1]} : vector<2x32xf32> to vector<1x32xf32>
    %c3_125 = arith.constant 3 : index
    %c0_126 = arith.constant 0 : index
    %261 = vector.load %arg5[%c3_125, %c0_126] : memref<16x32xf32, #tpu.memory_space<vmem>>, vector<1x32xf32>
    tpu.vector_store %arg5[%c3_125, %c0_126], %260 {strides = array<i32>} : memref<16x32xf32, #tpu.memory_space<vmem>>, vector<1x32xf32>,
    %262 = vector.extract_strided_slice %259 {offsets = [1, 0], sizes = [1, 32], strides = [1, 1]} : vector<2x32xf32> to vector<1x32xf32>
    %c11_127 = arith.constant 11 : index
    %c0_128 = arith.constant 0 : index
    %263 = vector.load %arg5[%c11_127, %c0_128] : memref<16x32xf32, #tpu.memory_space<vmem>>, vector<1x32xf32>
    tpu.vector_store %arg5[%c11_127, %c0_128], %262 {strides = array<i32>} : memref<16x32xf32, #tpu.memory_space<vmem>>, vector<1x32xf32>,
    %cst_129 = arith.constant dense<0.000000e+00> : vector<2x96xf32>
    %264 = tpu.matmul %259, %4, %cst_129 {dimension_numbers = #tpu.dot_dimension_numbers<[1], [0], [0], [1], [0, 0, 1, 1], [], []>} : vector<2x32xf32>, vector<32x96xf32>, vector<2x96xf32> -> vector<2x96xf32>
    %265 = vector.extract_strided_slice %119 {offsets = [0, 0], sizes = [2, 32], strides = [1, 1]} : vector<2x96xf32> to vector<2x32xf32>
    %266 = vector.extract_strided_slice %264 {offsets = [0, 0], sizes = [2, 32], strides = [1, 1]} : vector<2x96xf32> to vector<2x32xf32>
    %267 = arith.addf %265, %266 : vector<2x32xf32>
    %268 = arith.negf %267 : vector<2x32xf32>
    %269 = math.exp %268 : vector<2x32xf32>
    %cst_130 = arith.constant 1.000000e+00 : f32
    %270 = vector.broadcast %cst_130 : f32 to vector<2x32xf32>
    %271 = arith.addf %270, %269 : vector<2x32xf32>
    %272 = arith.divf %270, %271 : vector<2x32xf32>
    %273 = vector.extract_strided_slice %119 {offsets = [0, 32], sizes = [2, 32], strides = [1, 1]} : vector<2x96xf32> to vector<2x32xf32>
    %274 = vector.extract_strided_slice %264 {offsets = [0, 32], sizes = [2, 32], strides = [1, 1]} : vector<2x96xf32> to vector<2x32xf32>
    %275 = arith.addf %273, %274 : vector<2x32xf32>
    %276 = arith.negf %275 : vector<2x32xf32>
    %277 = math.exp %276 : vector<2x32xf32>
    %cst_131 = arith.constant 1.000000e+00 : f32
    %278 = vector.broadcast %cst_131 : f32 to vector<2x32xf32>
    %279 = arith.addf %278, %277 : vector<2x32xf32>
    %280 = arith.divf %278, %279 : vector<2x32xf32>
    %281 = vector.extract_strided_slice %119 {offsets = [0, 64], sizes = [2, 32], strides = [1, 1]} : vector<2x96xf32> to vector<2x32xf32>
    %282 = vector.extract_strided_slice %264 {offsets = [0, 64], sizes = [2, 32], strides = [1, 1]} : vector<2x96xf32> to vector<2x32xf32>
    %283 = arith.addf %282, %12 : vector<2x32xf32>
    %284 = arith.mulf %272, %283 : vector<2x32xf32>
    %285 = arith.addf %281, %284 : vector<2x32xf32>
    %286 = math.tanh %285 : vector<2x32xf32>
    %287 = arith.subf %259, %286 : vector<2x32xf32>
    %288 = arith.mulf %280, %287 : vector<2x32xf32>
    %289 = arith.addf %286, %288 : vector<2x32xf32>
    %290 = vector.extract_strided_slice %289 {offsets = [0, 0], sizes = [1, 32], strides = [1, 1]} : vector<2x32xf32> to vector<1x32xf32>
    %c4_132 = arith.constant 4 : index
    %c0_133 = arith.constant 0 : index
    %291 = vector.load %arg5[%c4_132, %c0_133] : memref<16x32xf32, #tpu.memory_space<vmem>>, vector<1x32xf32>
    tpu.vector_store %arg5[%c4_132, %c0_133], %290 {strides = array<i32>} : memref<16x32xf32, #tpu.memory_space<vmem>>, vector<1x32xf32>,
    %292 = vector.extract_strided_slice %289 {offsets = [1, 0], sizes = [1, 32], strides = [1, 1]} : vector<2x32xf32> to vector<1x32xf32>
    %c12_134 = arith.constant 12 : index
    %c0_135 = arith.constant 0 : index
    %293 = vector.load %arg5[%c12_134, %c0_135] : memref<16x32xf32, #tpu.memory_space<vmem>>, vector<1x32xf32>
    tpu.vector_store %arg5[%c12_134, %c0_135], %292 {strides = array<i32>} : memref<16x32xf32, #tpu.memory_space<vmem>>, vector<1x32xf32>,
    %cst_136 = arith.constant dense<0.000000e+00> : vector<2x96xf32>
    %294 = tpu.matmul %289, %4, %cst_136 {dimension_numbers = #tpu.dot_dimension_numbers<[1], [0], [0], [1], [0, 0, 1, 1], [], []>} : vector<2x32xf32>, vector<32x96xf32>, vector<2x96xf32> -> vector<2x96xf32>
    %295 = vector.extract_strided_slice %121 {offsets = [0, 0], sizes = [2, 32], strides = [1, 1]} : vector<2x96xf32> to vector<2x32xf32>
    %296 = vector.extract_strided_slice %294 {offsets = [0, 0], sizes = [2, 32], strides = [1, 1]} : vector<2x96xf32> to vector<2x32xf32>
    %297 = arith.addf %295, %296 : vector<2x32xf32>
    %298 = arith.negf %297 : vector<2x32xf32>
    %299 = math.exp %298 : vector<2x32xf32>
    %cst_137 = arith.constant 1.000000e+00 : f32
    %300 = vector.broadcast %cst_137 : f32 to vector<2x32xf32>
    %301 = arith.addf %300, %299 : vector<2x32xf32>
    %302 = arith.divf %300, %301 : vector<2x32xf32>
    %303 = vector.extract_strided_slice %121 {offsets = [0, 32], sizes = [2, 32], strides = [1, 1]} : vector<2x96xf32> to vector<2x32xf32>
    %304 = vector.extract_strided_slice %294 {offsets = [0, 32], sizes = [2, 32], strides = [1, 1]} : vector<2x96xf32> to vector<2x32xf32>
    %305 = arith.addf %303, %304 : vector<2x32xf32>
    %306 = arith.negf %305 : vector<2x32xf32>
    %307 = math.exp %306 : vector<2x32xf32>
    %cst_138 = arith.constant 1.000000e+00 : f32
    %308 = vector.broadcast %cst_138 : f32 to vector<2x32xf32>
    %309 = arith.addf %308, %307 : vector<2x32xf32>
    %310 = arith.divf %308, %309 : vector<2x32xf32>
    %311 = vector.extract_strided_slice %121 {offsets = [0, 64], sizes = [2, 32], strides = [1, 1]} : vector<2x96xf32> to vector<2x32xf32>
    %312 = vector.extract_strided_slice %294 {offsets = [0, 64], sizes = [2, 32], strides = [1, 1]} : vector<2x96xf32> to vector<2x32xf32>
    %313 = arith.addf %312, %12 : vector<2x32xf32>
    %314 = arith.mulf %302, %313 : vector<2x32xf32>
    %315 = arith.addf %311, %314 : vector<2x32xf32>
    %316 = math.tanh %315 : vector<2x32xf32>
    %317 = arith.subf %289, %316 : vector<2x32xf32>
    %318 = arith.mulf %310, %317 : vector<2x32xf32>
    %319 = arith.addf %316, %318 : vector<2x32xf32>
    %320 = vector.extract_strided_slice %319 {offsets = [0, 0], sizes = [1, 32], strides = [1, 1]} : vector<2x32xf32> to vector<1x32xf32>
    %c5_139 = arith.constant 5 : index
    %c0_140 = arith.constant 0 : index
    %321 = vector.load %arg5[%c5_139, %c0_140] : memref<16x32xf32, #tpu.memory_space<vmem>>, vector<1x32xf32>
    tpu.vector_store %arg5[%c5_139, %c0_140], %320 {strides = array<i32>} : memref<16x32xf32, #tpu.memory_space<vmem>>, vector<1x32xf32>,
    %322 = vector.extract_strided_slice %319 {offsets = [1, 0], sizes = [1, 32], strides = [1, 1]} : vector<2x32xf32> to vector<1x32xf32>
    %c13_141 = arith.constant 13 : index
    %c0_142 = arith.constant 0 : index
    %323 = vector.load %arg5[%c13_141, %c0_142] : memref<16x32xf32, #tpu.memory_space<vmem>>, vector<1x32xf32>
    tpu.vector_store %arg5[%c13_141, %c0_142], %322 {strides = array<i32>} : memref<16x32xf32, #tpu.memory_space<vmem>>, vector<1x32xf32>,
    %cst_143 = arith.constant dense<0.000000e+00> : vector<2x96xf32>
    %324 = tpu.matmul %319, %4, %cst_143 {dimension_numbers = #tpu.dot_dimension_numbers<[1], [0], [0], [1], [0, 0, 1, 1], [], []>} : vector<2x32xf32>, vector<32x96xf32>, vector<2x96xf32> -> vector<2x96xf32>
    %325 = vector.extract_strided_slice %123 {offsets = [0, 0], sizes = [2, 32], strides = [1, 1]} : vector<2x96xf32> to vector<2x32xf32>
    %326 = vector.extract_strided_slice %324 {offsets = [0, 0], sizes = [2, 32], strides = [1, 1]} : vector<2x96xf32> to vector<2x32xf32>
    %327 = arith.addf %325, %326 : vector<2x32xf32>
    %328 = arith.negf %327 : vector<2x32xf32>
    %329 = math.exp %328 : vector<2x32xf32>
    %cst_144 = arith.constant 1.000000e+00 : f32
    %330 = vector.broadcast %cst_144 : f32 to vector<2x32xf32>
    %331 = arith.addf %330, %329 : vector<2x32xf32>
    %332 = arith.divf %330, %331 : vector<2x32xf32>
    %333 = vector.extract_strided_slice %123 {offsets = [0, 32], sizes = [2, 32], strides = [1, 1]} : vector<2x96xf32> to vector<2x32xf32>
    %334 = vector.extract_strided_slice %324 {offsets = [0, 32], sizes = [2, 32], strides = [1, 1]} : vector<2x96xf32> to vector<2x32xf32>
    %335 = arith.addf %333, %334 : vector<2x32xf32>
    %336 = arith.negf %335 : vector<2x32xf32>
    %337 = math.exp %336 : vector<2x32xf32>
    %cst_145 = arith.constant 1.000000e+00 : f32
    %338 = vector.broadcast %cst_145 : f32 to vector<2x32xf32>
    %339 = arith.addf %338, %337 : vector<2x32xf32>
    %340 = arith.divf %338, %339 : vector<2x32xf32>
    %341 = vector.extract_strided_slice %123 {offsets = [0, 64], sizes = [2, 32], strides = [1, 1]} : vector<2x96xf32> to vector<2x32xf32>
    %342 = vector.extract_strided_slice %324 {offsets = [0, 64], sizes = [2, 32], strides = [1, 1]} : vector<2x96xf32> to vector<2x32xf32>
    %343 = arith.addf %342, %12 : vector<2x32xf32>
    %344 = arith.mulf %332, %343 : vector<2x32xf32>
    %345 = arith.addf %341, %344 : vector<2x32xf32>
    %346 = math.tanh %345 : vector<2x32xf32>
    %347 = arith.subf %319, %346 : vector<2x32xf32>
    %348 = arith.mulf %340, %347 : vector<2x32xf32>
    %349 = arith.addf %346, %348 : vector<2x32xf32>
    %350 = vector.extract_strided_slice %349 {offsets = [0, 0], sizes = [1, 32], strides = [1, 1]} : vector<2x32xf32> to vector<1x32xf32>
    %c6_146 = arith.constant 6 : index
    %c0_147 = arith.constant 0 : index
    %351 = vector.load %arg5[%c6_146, %c0_147] : memref<16x32xf32, #tpu.memory_space<vmem>>, vector<1x32xf32>
    tpu.vector_store %arg5[%c6_146, %c0_147], %350 {strides = array<i32>} : memref<16x32xf32, #tpu.memory_space<vmem>>, vector<1x32xf32>,
    %352 = vector.extract_strided_slice %349 {offsets = [1, 0], sizes = [1, 32], strides = [1, 1]} : vector<2x32xf32> to vector<1x32xf32>
    %c14_148 = arith.constant 14 : index
    %c0_149 = arith.constant 0 : index
    %353 = vector.load %arg5[%c14_148, %c0_149] : memref<16x32xf32, #tpu.memory_space<vmem>>, vector<1x32xf32>
    tpu.vector_store %arg5[%c14_148, %c0_149], %352 {strides = array<i32>} : memref<16x32xf32, #tpu.memory_space<vmem>>, vector<1x32xf32>,
    %cst_150 = arith.constant dense<0.000000e+00> : vector<2x96xf32>
    %354 = tpu.matmul %349, %4, %cst_150 {dimension_numbers = #tpu.dot_dimension_numbers<[1], [0], [0], [1], [0, 0, 1, 1], [], []>} : vector<2x32xf32>, vector<32x96xf32>, vector<2x96xf32> -> vector<2x96xf32>
    %355 = vector.extract_strided_slice %125 {offsets = [0, 0], sizes = [2, 32], strides = [1, 1]} : vector<2x96xf32> to vector<2x32xf32>
    %356 = vector.extract_strided_slice %354 {offsets = [0, 0], sizes = [2, 32], strides = [1, 1]} : vector<2x96xf32> to vector<2x32xf32>
    %357 = arith.addf %355, %356 : vector<2x32xf32>
    %358 = arith.negf %357 : vector<2x32xf32>
    %359 = math.exp %358 : vector<2x32xf32>
    %cst_151 = arith.constant 1.000000e+00 : f32
    %360 = vector.broadcast %cst_151 : f32 to vector<2x32xf32>
    %361 = arith.addf %360, %359 : vector<2x32xf32>
    %362 = arith.divf %360, %361 : vector<2x32xf32>
    %363 = vector.extract_strided_slice %125 {offsets = [0, 32], sizes = [2, 32], strides = [1, 1]} : vector<2x96xf32> to vector<2x32xf32>
    %364 = vector.extract_strided_slice %354 {offsets = [0, 32], sizes = [2, 32], strides = [1, 1]} : vector<2x96xf32> to vector<2x32xf32>
    %365 = arith.addf %363, %364 : vector<2x32xf32>
    %366 = arith.negf %365 : vector<2x32xf32>
    %367 = math.exp %366 : vector<2x32xf32>
    %cst_152 = arith.constant 1.000000e+00 : f32
    %368 = vector.broadcast %cst_152 : f32 to vector<2x32xf32>
    %369 = arith.addf %368, %367 : vector<2x32xf32>
    %370 = arith.divf %368, %369 : vector<2x32xf32>
    %371 = vector.extract_strided_slice %125 {offsets = [0, 64], sizes = [2, 32], strides = [1, 1]} : vector<2x96xf32> to vector<2x32xf32>
    %372 = vector.extract_strided_slice %354 {offsets = [0, 64], sizes = [2, 32], strides = [1, 1]} : vector<2x96xf32> to vector<2x32xf32>
    %373 = arith.addf %372, %12 : vector<2x32xf32>
    %374 = arith.mulf %362, %373 : vector<2x32xf32>
    %375 = arith.addf %371, %374 : vector<2x32xf32>
    %376 = math.tanh %375 : vector<2x32xf32>
    %377 = arith.subf %349, %376 : vector<2x32xf32>
    %378 = arith.mulf %370, %377 : vector<2x32xf32>
    %379 = arith.addf %376, %378 : vector<2x32xf32>
    %380 = vector.extract_strided_slice %379 {offsets = [0, 0], sizes = [1, 32], strides = [1, 1]} : vector<2x32xf32> to vector<1x32xf32>
    %c7_153 = arith.constant 7 : index
    %c0_154 = arith.constant 0 : index
    %381 = vector.load %arg5[%c7_153, %c0_154] : memref<16x32xf32, #tpu.memory_space<vmem>>, vector<1x32xf32>
    tpu.vector_store %arg5[%c7_153, %c0_154], %380 {strides = array<i32>} : memref<16x32xf32, #tpu.memory_space<vmem>>, vector<1x32xf32>,
    %382 = vector.extract_strided_slice %379 {offsets = [1, 0], sizes = [1, 32], strides = [1, 1]} : vector<2x32xf32> to vector<1x32xf32>
    %c15_155 = arith.constant 15 : index
    %c0_156 = arith.constant 0 : index
    %383 = vector.load %arg5[%c15_155, %c0_156] : memref<16x32xf32, #tpu.memory_space<vmem>>, vector<1x32xf32>
    tpu.vector_store %arg5[%c15_155, %c0_156], %382 {strides = array<i32>} : memref<16x32xf32, #tpu.memory_space<vmem>>, vector<1x32xf32>,
    %c0_157 = arith.constant 0 : index
    %c0_158 = arith.constant 0 : index
    %384 = vector.load %arg5[%c0_157, %c0_158] : memref<16x32xf32, #tpu.memory_space<vmem>>, vector<16x32xf32>
    %cst_159 = arith.constant dense<0.000000e+00> : vector<16x32xf32>
    %385 = tpu.matmul %384, %5, %cst_159 {dimension_numbers = #tpu.dot_dimension_numbers<[1], [0], [0], [1], [0, 0, 1, 1], [], []>} : vector<16x32xf32>, vector<32x32xf32>, vector<16x32xf32> -> vector<16x32xf32>
    %386 = vector.broadcast %13 : vector<1x32xf32> to vector<16x32xf32>
    %387 = arith.addf %385, %386 : vector<16x32xf32>
    %388 = math.tanh %387 : vector<16x32xf32>
    %cst_160 = arith.constant dense<0.000000e+00> : vector<16x64xf32>
    %389 = tpu.matmul %388, %6, %cst_160 {dimension_numbers = #tpu.dot_dimension_numbers<[1], [0], [0], [1], [0, 0, 1, 1], [], []>} : vector<16x32xf32>, vector<32x64xf32>, vector<16x64xf32> -> vector<16x64xf32>
    %390 = vector.broadcast %14 : vector<1x64xf32> to vector<16x64xf32>
    %391 = arith.addf %389, %390 : vector<16x64xf32>
    %392 = vector.extract_strided_slice %391 {offsets = [0, 0], sizes = [8, 64], strides = [1, 1]} : vector<16x64xf32> to vector<8x64xf32>
    %c0_161 = arith.constant 0 : index
    %c0_162 = arith.constant 0 : index
    %c0_163 = arith.constant 0 : index
    %393 = vector.load %arg3[%c0_161, %c0_162, %c0_163] : memref<2x8x64xf32, #tpu.memory_space<vmem>>, vector<1x8x64xf32>
    %394 = vector.shape_cast %393 : vector<1x8x64xf32> to vector<8x64xf32>
    %395 = vector.shape_cast %392 : vector<8x64xf32> to vector<1x8x64xf32>
    tpu.vector_store %arg3[%c0_161, %c0_162, %c0_163], %395 {strides = array<i32>} : memref<2x8x64xf32, #tpu.memory_space<vmem>>, vector<1x8x64xf32>,
    %396 = vector.extract_strided_slice %391 {offsets = [8, 0], sizes = [8, 64], strides = [1, 1]} : vector<16x64xf32> to vector<8x64xf32>
    %c1_164 = arith.constant 1 : index
    %c0_165 = arith.constant 0 : index
    %c0_166 = arith.constant 0 : index
    %397 = vector.load %arg3[%c1_164, %c0_165, %c0_166] : memref<2x8x64xf32, #tpu.memory_space<vmem>>, vector<1x8x64xf32>
    %398 = vector.shape_cast %397 : vector<1x8x64xf32> to vector<8x64xf32>
    %399 = vector.shape_cast %396 : vector<8x64xf32> to vector<1x8x64xf32>
    tpu.vector_store %arg3[%c1_164, %c0_165, %c0_166], %399 {strides = array<i32>} : memref<2x8x64xf32, #tpu.memory_space<vmem>>, vector<1x8x64xf32>,
    return
  }
}

</mosaic_0001>

<bundles_post_ra>
// kernel: decoder_forward.1
= control target key start
LH: loop header
LB: loop body
LE: loop exit
PB: predicated region body
PF: predicated region fallthrough
CT: control target
= control target key end

     0   :  { %8 = vsyncpa [#allocation7], 0  ;;  %s1386_s0 = inlined_call_operand.vmem [shape: s32[16], index: 0, kind: input, shape index: {}]   ;;  %s1387_s1 = inlined_call_operand.vmem [shape: f32[2,16], index: 1, kind: input, shape index: {}]   ;;  %s1388_s2 = inlined_call_operand.hbm [shape: f32[280,96], index: 2, kind: input, shape index: {}]   ;;  %s1389_s3 = inlined_call_operand.hbm [shape: f32[2,8,64], index: 3, kind: output, shape index: {}]  }
   0x1   :  { %9 = vsyncpa [#allocation5], 0 }
   0x2   :  { %10 = vsyncpa [#allocation6], 0  ;;  %s16_s14 = sshll.u32 %s1386_s0, 4  ;;  %s26_s17 = sshll.u32 %s1388_s2, 4  ;;  %s17_s14 = int_to_ptr.vmem [resolvable:$true] %s16_s14  ;;  %s27_s17 = int_to_ptr.hbm [resolvable:$true] %s26_s17 }
   0x3   :  { %s1197_s18 = smov [#allocation4]   ;;  %s1198_s19 = smov [#allocation8]  }
   0x4   :  { %19 = dma.vmem_to_smem %s17_s14, 16, %s1197_s18, [#allocation7]  }
   0x5   :  { %s28_s20 = sshll.u32 %s1198_s19, 4  ;;  %s1199_s21 = smov 128   ;;  %s29_s20 = int_to_ptr.vmem [resolvable:$true] %s28_s20 }
   0x6   :  { %s1200_s22 = smov 8  }
   0x7   :  { %34 = dma.hbm_to_vmem [thread:$0]  %s27_s17, 4480, %s29_s20, [#allocation5], %s1199_s21, %s1199_s21, %s1200_s22  }
   0x8   :  { %1191 = dma.done.wait [#allocation7], 16  }
   0x9   :  { %1192 = vsyncadd [#allocation7], 4294967280 }
   0xa   :  { %1193 = dma.done.wait [#allocation5], 4480  }
   0xb   :  { %1194 = vsyncadd [#allocation5], 4294962816 }
   0xc   :  { %43 = sfence }
   0xd   :  { %v45_v0 = vld [vmem:[#allocation8 + $0xa8] sm:$0xff]  ;;  %v44_v1 = vld [vmem:[#allocation8 + $0xa0] sm:$0xff]  ;;  %vm160_vm0 = vcmask 130048   ;;  %v47_v5 = vld [vmem:[#allocation8 + $0xb8] sm:$0xff]  ;;  %vm186_vm1 = vcmask 261120   ;;  %s1004_s23 = sld [smem:[#allocation4 + $0x8]] }
   0xe   :  { %178 = vmatpush.msra.mxu3 %v45_v0  ;;  %v158_v2 = vld [vmem:[%s1387_s1] sm:$0x3]  ;;  %v49_v3 = vld [vmem:[#allocation8 + $0xc8] sm:$0xff]  ;;  %v46_v6 = vld [vmem:[#allocation8 + $0xb0] sm:$0xff]  ;;  %s77_s1 = sld [smem:[#allocation4]]  ;;  %vm81_vm2 = vcmask 778240  }
   0xf   :  { %202 = vmatpush.msra.mxu2 %v49_v3  ;;  %v48_v4 = vld [vmem:[#allocation8 + $0xc0] sm:$0xff]  ;;  %v57_v7 = vld [vmem:[#allocation8 + $0x38] sm:$0xff]  ;;  %v56_v9 = vld [vmem:[#allocation8 + $0x30] sm:$0xff]  ;;  %s1006_s24 = sld [smem:[#allocation4 + $0x1]]  ;;  %vm382_vm11 = vcmask 253952   ;;  %vm384_vm12 = vcmask 254977  }
  0x10   :  { %179 = vmatpush.msra.mxu3 %v44_v1  ;;  %v53_v8 = vld [vmem:[#allocation8 + $0x18] sm:$0xff]  ;;  %v52_v10 = vld [vmem:[#allocation8 + $0x10] sm:$0xff]  ;;  %v55_v11 = vld [vmem:[#allocation8 + $0x28] sm:$0xff]  ;;  %s1008_s25 = sld [smem:[#allocation4 + $0x9]] }
  0x11   :  { %1034 = vmatmul.msk.f32.vlgmr.msra.gmra.mxu3 %vm160_vm0, %v158_v2  ;;  %203 = vmatpush.msra.mxu2 %v48_v4  ;;  %v1067_v12 = vld [vmem:[#allocation8 + $0x110] ss:$0 sm:$0xff]  ;;  %v51_v16 = vld [vmem:[#allocation8 + $0x8] sm:$0xff]  ;;  %v54_v17 = vld [vmem:[#allocation8 + $0x20] sm:$0xff]  ;;  %s1010_s26 = sld [smem:[#allocation4 + $0x2]] }
  0x12   :  { %246 = vmatpush.msrb.mxu3 %v57_v7  ;;  %v50_v18 = vld [vmem:[#allocation8] sm:$0xff]  ;;  %v1068_v19 = vld [vmem:[#allocation8 + $0x111] ss:$0 sm:$0xff]  ;;  %s1012_s27 = sld [smem:[#allocation4 + $0xa]]  ;;  %v1070_v38 = vld [vmem:[#allocation8 + $0x113] ss:$0 sm:$0xff] }
  0x13   :  { %204 = vmatpush.msra.mxu2 %v47_v5  ;;  %s1014_s28 = sld [smem:[#allocation4 + $0x3]]  ;;  %s973_s11 = scalar_lea.vmem [#allocation8], %s1004_s23  ;;  %v1284_v39 = vld [vmem:[#allocation8 + $0x112] ss:$0 sm:$0xff]  ;;  %v61_v61 = vld [vmem:[#allocation8 + $0x58] sm:$0xff]  ;;  %v59_v63 = vld [vmem:[#allocation8 + $0x48] sm:$0xff] }
  0x14   :  { %247 = vmatpush.msrb.mxu3 %v56_v9  ;;  %s1240_s29 = sld [smem:[#allocation4 + $0xb]]  ;;  %s971_s10 = scalar_lea.vmem [#allocation8], %s77_s1  ;;  %v1005_v23 = vld [vmem:[%s973_s11 + $0x60] sm:$0x1]  ;;  %v60_v62 = vld [vmem:[#allocation8 + $0x50] sm:$0xff]  ;;  %323 = vmatpush.msra.mxu0 %v61_v61 }
  0x15   :  { %205 = vmatpush.msra.mxu2 %v46_v6  ;;  %s1242_s30 = sld [smem:[#allocation4 + $0x4]]  ;;  %v1003_v22 = vld [vmem:[%s971_s10 + $0x60] sm:$0x1]  ;;  %s975_s12 = scalar_lea.vmem [#allocation8], %s1006_s24  ;;  %87 = vst.msk [vmem:[#allocation2 + $0x1] sm:$0x1] %vm81_vm2, %v1005_v23  ;;  %400 = vmatpush.msra.mxu1 %v61_v61 }
  0x16   :  { %248 = vmatpush.msrb.mxu3 %v55_v11  ;;  %s1244_s4 = sld [smem:[#allocation4 + $0xc]]  ;;  %82 = vst.msk [vmem:[#allocation2] sm:$0x1] %vm81_vm2, %v1003_v22  ;;  %v1007_v24 = vld [vmem:[%s975_s12 + $0x60] sm:$0x1]  ;;  %s977_s13 = scalar_lea.vmem [#allocation8], %s1008_s25  ;;  %324 = vmatpush.msra.mxu0 %v60_v62 }
  0x17   :  { %226 = vmatpush.msrb.mxu2 %v53_v8  ;;  %s1246_s5 = sld [smem:[#allocation4 + $0x5]]  ;;  %v1009_v25 = vld [vmem:[%s977_s13 + $0x60] sm:$0x1]  ;;  %s979_s14 = scalar_lea.vmem [#allocation8], %s1010_s26  ;;  %92 = vst.msk [vmem:[#allocation2 + $0x2] sm:$0x1] %vm81_vm2, %v1007_v24  ;;  %401 = vmatpush.msra.mxu1 %v60_v62 }
  0x18   :  { %249 = vmatpush.msrb.mxu3 %v54_v17  ;;  %s1248_s6 = sld [smem:[#allocation4 + $0xd]]  ;;  %v1011_v26 = vld [vmem:[%s979_s14 + $0x60] sm:$0x1]  ;;  %s981_s16 = scalar_lea.vmem [#allocation8], %s1012_s27  ;;  %97 = vst.msk [vmem:[#allocation2 + $0x3] sm:$0x1] %vm81_vm2, %v1009_v25  ;;  %325 = vmatpush.msra.mxu0 %v59_v63 }
  0x19   :  { %227 = vmatpush.msrb.mxu2 %v52_v10  ;;  %s1250_s7 = sld [smem:[#allocation4 + $0x6]]  ;;  %v1013_v27 = vld [vmem:[%s981_s16 + $0x60] sm:$0x1]  ;;  %s983_s17 = scalar_lea.vmem [#allocation8], %s1014_s28  ;;  %102 = vst.msk [vmem:[#allocation2 + $0x4] sm:$0x1] %vm81_vm2, %v1011_v26  ;;  %402 = vmatpush.msra.mxu1 %v59_v63 }
  0x1a   :  { %s1252_s8 = sld [smem:[#allocation4 + $0xe]]  ;;  %v1015_v28 = vld [vmem:[%s983_s17 + $0x60] sm:$0x1]  ;;  %s985_s18 = scalar_lea.vmem [#allocation8], %s1240_s29  ;;  %107 = vst.msk [vmem:[#allocation2 + $0x5] sm:$0x1] %vm81_vm2, %v1013_v27  ;;  %542 = vmatpush.msra.mxu3 %v61_v61 }
  0x1b   :  { %228 = vmatpush.msrb.mxu2 %v51_v16  ;;  %s1254_s9 = sld [smem:[#allocation4 + $0x7]]  ;;  %v1017_v29 = vld [vmem:[%s985_s18 + $0x60] sm:$0x1]  ;;  %s987_s19 = scalar_lea.vmem [#allocation8], %s1242_s30  ;;  %112 = vst.msk [vmem:[#allocation2 + $0x6] sm:$0x1] %vm81_vm2, %v1015_v28 }
  0x1c   :  { %s1258_s15 = sld [smem:[#allocation4 + $0xf]]  ;;  %v1019_v30 = vld [vmem:[%s987_s19 + $0x60] sm:$0x1]  ;;  %s989_s20 = scalar_lea.vmem [#allocation8], %s1244_s4  ;;  %117 = vst.msk [vmem:[#allocation2 + $0x7] sm:$0x1] %vm81_vm2, %v1017_v29  ;;  %543 = vmatpush.msra.mxu3 %v60_v62 }
  0x1d   :  { %229 = vmatpush.msrb.mxu2 %v50_v18  ;;  %v1021_v31 = vld [vmem:[%s989_s20 + $0x60] sm:$0x1]  ;;  %s991_s0 = scalar_lea.vmem [#allocation8], %s1246_s5  ;;  %122 = vst.msk [vmem:[#allocation2 + $0x8] sm:$0x1] %vm81_vm2, %v1019_v30  ;;  %s1201_s26 = smov 64  }
  0x1e   :  { %v1023_v32 = vld [vmem:[%s991_s0 + $0x60] sm:$0x1]  ;;  %s993_s2 = scalar_lea.vmem [#allocation8], %s1248_s6  ;;  %127 = vst.msk [vmem:[#allocation2 + $0x9] sm:$0x1] %vm81_vm2, %v1021_v31  ;;  %352 = vrot.lane.b32.xlu2 %v1070_v38, %s1201_s26  ;;  %s1202_s27 = smov 96   ;;  %544 = vmatpush.msra.mxu3 %v59_v63 }
  0x1f   :  { %v1025_v33 = vld [vmem:[%s993_s2 + $0x60] sm:$0x1]  ;;  %s995_s1 = scalar_lea.vmem [#allocation8], %s1250_s7  ;;  %132 = vst.msk [vmem:[#allocation2 + $0xa] sm:$0x1] %vm81_vm2, %v1023_v32  ;;  %s1203_s28 = smov 32  }
  0x20   :  { %v1027_v34 = vld [vmem:[%s995_s1 + $0x60] sm:$0x1]  ;;  %s997_s23 = scalar_lea.vmem [#allocation8], %s1252_s8  ;;  %137 = vst.msk [vmem:[#allocation2 + $0xb] sm:$0x1] %vm81_vm2, %v1025_v33  ;;  %s1204_s29 = smov [#allocation9]  }
  0x21   :  { %v1029_v35 = vld [vmem:[%s997_s23 + $0x60] sm:$0x1]  ;;  %s999_s24 = scalar_lea.vmem [#allocation8], %s1254_s9  ;;  %142 = vst.msk [vmem:[#allocation2 + $0xc] sm:$0x1] %vm81_vm2, %v1027_v34  ;;  %s955_s30 = sshll.u32 %s1204_s29, 4  ;;  %s956_s30 = int_to_ptr.vmem [resolvable:$true] %s955_s30 }
  0x22   :  { %v1031_v36 = vld [vmem:[%s999_s24 + $0x60] sm:$0x1]  ;;  %s1001_s25 = scalar_lea.vmem [#allocation8], %s1258_s15  ;;  %147 = vst.msk [vmem:[#allocation2 + $0xd] sm:$0x1] %vm81_vm2, %v1029_v35  ;;  %s957_s6 = sshll.u32 %s1389_s3, 4  ;;  %s958_s6 = int_to_ptr.hbm [resolvable:$true] %s957_s6 }
  0x23   :  { %v1033_v37 = vld [vmem:[%s1001_s25 + $0x60] sm:$0x1]  ;;  %152 = vst.msk [vmem:[#allocation2 + $0xe] sm:$0x1] %vm81_vm2, %v1031_v36 }
  0x24   :  { %157 = vst.msk [vmem:[#allocation2 + $0xf] sm:$0x1] %vm81_vm2, %v1033_v37  ;;  %v58_v0 = vld [vmem:[#allocation8 + $0x40] sm:$0xff] }
  0x25   :  { %326 = vmatpush.msra.mxu0 %v58_v0  ;;  %403 = vmatpush.msra.mxu1 %v58_v0  ;;  %v254_v9 = vld [vmem:[#allocation2] sm:$0x3] }
  0x26   :  { %545 = vmatpush.msra.mxu3 %v58_v0 }
  0x27   :  { %613 = vmatpush.msrb.mxu0 %v61_v61  ;;  %684 = vmatpush.msrb.mxu1 %v61_v61 }
  0x29   :  { %614 = vmatpush.msrb.mxu0 %v60_v62  ;;  %685 = vmatpush.msrb.mxu1 %v60_v62 }
  0x2b   :  { %615 = vmatpush.msrb.mxu0 %v59_v63  ;;  %686 = vmatpush.msrb.mxu1 %v59_v63 }
  0x2d   :  { %616 = vmatpush.msrb.mxu0 %v58_v0  ;;  %687 = vmatpush.msrb.mxu1 %v58_v0 }
  0x78   :  { %v1292_v4 = vpop.permute.xlu2 %352 }
  0x94   :  { %v181_v13 = vpop.f32.mrf.mxu3 }
  0x95   :  { %v182_v14 = vadd.f32 %v1067_v12, %v181_v13 }
  0x97   :  { %v184_v15 = vmax.f32 %v182_v14, 0.0 }
  0x99   :  { %1035 = vmatmul.msk.f32.vlgmr.msra.gmra.mxu2 %vm186_vm1, %v184_v15 }
  0x9a   :  { %471 = vmatpush.msra.mxu2 %v61_v61 }
  0x9c   :  { %472 = vmatpush.msra.mxu2 %v60_v62 }
  0x9e   :  { %473 = vmatpush.msra.mxu2 %v59_v63 }
  0xa0   :  { %474 = vmatpush.msra.mxu2 %v58_v0 }
 0x11c   :  { %v207_v20 = vpop.f32.mrf.mxu2 }
 0x11d   :  { %v208_v21 = vadd.f32 %v1068_v19, %v207_v20 }
 0x11f   :  { %1036 = vmatmul.msk.f32.vlgmr.msrb.gmra.mxu2 %vm186_vm1, %v208_v21  ;;  %1037 = vmatmul.msk.f32.vlgmr.msrb.gmra.mxu3 %vm186_vm1, %v208_v21 }
 0x120   :  { %755 = vmatpush.msrb.mxu2 %v61_v61  ;;  %826 = vmatpush.msrb.mxu3 %v61_v61 }
 0x122   :  { %756 = vmatpush.msrb.mxu2 %v60_v62  ;;  %827 = vmatpush.msrb.mxu3 %v60_v62 }
 0x124   :  { %757 = vmatpush.msrb.mxu2 %v59_v63  ;;  %828 = vmatpush.msrb.mxu3 %v59_v63 }
 0x126   :  { %758 = vmatpush.msrb.mxu2 %v58_v0  ;;  %829 = vmatpush.msrb.mxu3 %v58_v0 }
 0x1a2   :  { %v251_v40 = vpop.f32.mrf.mxu3  ;;  %v231_v7 = vpop.f32.mrf.mxu2 }
 0x1a3   :  { %v252_v41 = vadd.f32 %v1284_v39, %v251_v40  ;;  %v1297_v8 = vadd.f32 %v1284_v39, %v231_v7 }
 0x1a5   :  { %v1038_v42 = vmul.f32 -1.442695, %v252_v41  ;;  %v255_v10 = vadd.f32 %v254_v9, %v1297_v8 }
 0x1a7   :  { %1073 = vpow2.f32 %v1038_v42 }
 0x1ad   :  { %v1074_v43 = vpop.eup %1073 }
 0x1ae   :  { %v273_v44 = vadd.f32 1.0, %v1074_v43 }
 0x1b0   :  { %1075 = vrcp.f32 %v273_v44  ;;  %v285_v48 = vand.u32 2147483648, %v273_v44  ;;  %v283_v50 = vand.u32 2147483647, %v273_v44  ;;  %vm279_vm4 = vweird.f32 %v273_v44 }
 0x1b2   :  { %v286_v52 = vor.u32 1.1754944e-38, %v285_v48  ;;  %vm284_vm6 = vcmp.eq.f32.partialorder %v283_v50, 8.507059e+37 }
 0x1b6   :  { %v1076_v45 = vpop.eup %1075 }
 0x1b7   :  { %v275_v46 = vmul.f32 %v1076_v45, %v273_v44  ;;  %vm280_vm3 = vweird.f32 %v1076_v45 }
 0x1b8   :  { %vm281_vm5 = vmor %vm279_vm4, %vm280_vm3 }
 0x1b9   :  { %v276_v47 = vsub.f32 1.0, %v275_v46 }
 0x1bb   :  { %v277_v49 = vmul.f32 %v1076_v45, %v276_v47 }
 0x1bd   :  { %v278_v51 = vadd.f32 %v1076_v45, %v277_v49 }
 0x1bf   :  { %v282_v53 = vsel %vm281_vm5, %v1076_v45, %v278_v51 }
 0x1c0   :  { %v287_v54 = vsel %vm284_vm6, %v286_v52, %v282_v53 }
 0x1c1   :  { %v289_v55 = vmul.f32 %v1070_v38, %v287_v54  ;;  %v256_v38 = vld [vmem:[#allocation2 + $0x2] sm:$0x3] }
 0x1c2   :  { %v257_v39 = vadd.f32 %v256_v38, %v1297_v8 }
 0x1c3   :  { %291 = vrot.lane.b32.xlu0 %v289_v55, %s1201_s26 }
 0x235   :  { %v292_v56 = vpop.permute.xlu0 %291 }
 0x236   :  { %v294_v57 = vadd.f32 %v292_v56, %v252_v41 }
 0x238   :  { %1077 = vtanh.f32 %v294_v57 }
 0x23e   :  { %v1078_v58 = vpop.eup %1077 }
 0x23f   :  { %297 = vrot.lane.b32.xlu0 %v1078_v58, %s1202_s27 }
 0x2b1   :  { %v298_v59 = vpop.permute.xlu0 %297 }
 0x2b2   :  { %v300_v60 = vmul.f32 %v298_v59, %v287_v54 }
 0x2b4   :  { %302 = vrot.lane.b32.xlu1 %v300_v60, %s1203_s28 }
 0x326   :  { %v303_v1 = vpop.permute.xlu1 %302 }
 0x327   :  { %v305_v2 = vsub.f32 %v1078_v58, %v303_v1 }
 0x329   :  { %307 = vrot.lane.b32.xlu1 %v305_v2, %s1201_s26 }
 0x39b   :  { %v308_v3 = vpop.permute.xlu1 %307 }
 0x39c   :  { %1039 = vmatmul.msk.f32.vlgmr.msra.gmra.mxu0 %vm186_vm1, %v308_v3  ;;  %v258_v3 = vld [vmem:[#allocation2 + $0x4] sm:$0x3] }
 0x419   :  { %v328_v5 = vpop.f32.mrf.mxu0 }
 0x41a   :  { %v355_v6 = vadd.f32 %v1292_v4, %v328_v5  ;;  %v331_v11 = vadd.f32 %v328_v5, %v255_v10  ;;  %v259_v5 = vadd.f32 %v258_v3, %v1297_v8 }
 0x41c   :  { %357 = vrot.lane.b32.xlu2 %v355_v6, %s1201_s26  ;;  %v1040_v12 = vmul.f32 -1.442695, %v331_v11 }
 0x41e   :  { %1079 = vpow2.f32 %v1040_v12 }
 0x424   :  { %v1080_v13 = vpop.eup %1079 }
 0x425   :  { %v335_v14 = vadd.f32 1.0, %v1080_v13 }
 0x427   :  { %1081 = vrcp.f32 %v335_v14  ;;  %v347_v20 = vand.u32 2147483648, %v335_v14  ;;  %vm341_vm8 = vweird.f32 %v335_v14  ;;  %v345_v21 = vand.u32 2147483647, %v335_v14 }
 0x429   :  { %v348_v23 = vor.u32 1.1754944e-38, %v347_v20  ;;  %vm346_vm10 = vcmp.eq.f32.partialorder %v345_v21, 8.507059e+37 }
 0x42d   :  { %v1082_v15 = vpop.eup %1081 }
 0x42e   :  { %v337_v16 = vmul.f32 %v1082_v15, %v335_v14  ;;  %vm342_vm7 = vweird.f32 %v1082_v15 }
 0x42f   :  { %vm343_vm9 = vmor %vm341_vm8, %vm342_vm7 }
 0x430   :  { %v338_v17 = vsub.f32 1.0, %v337_v16 }
 0x432   :  { %v339_v18 = vmul.f32 %v1082_v15, %v338_v17 }
 0x434   :  { %v340_v19 = vadd.f32 %v1082_v15, %v339_v18 }
 0x436   :  { %v344_v22 = vsel %vm343_vm9, %v1082_v15, %v340_v19 }
 0x437   :  { %v349_v25 = vsel %vm346_vm10, %v348_v23, %v344_v22 }
 0x476   :  { %v358_v24 = vpop.permute.xlu2 %357 }
 0x477   :  { %v360_v26 = vmul.f32 %v358_v24, %v349_v25 }
 0x479   :  { %362 = vrot.lane.b32.xlu0 %v360_v26, %s1201_s26 }
 0x4eb   :  { %v363_v27 = vpop.permute.xlu0 %362 }
 0x4ec   :  { %v365_v28 = vadd.f32 %v363_v27, %v255_v10 }
 0x4ee   :  { %1083 = vtanh.f32 %v365_v28 }
 0x4f4   :  { %v1084_v29 = vpop.eup %1083 }
 0x4f5   :  { %v367_v30 = vsub.f32 %v305_v2, %v1084_v29 }
 0x4f7   :  { %369 = vrot.lane.b32.xlu1 %v367_v30, %s1202_s27 }
 0x569   :  { %v370_v31 = vpop.permute.xlu1 %369 }
 0x56a   :  { %v372_v32 = vmul.f32 %v370_v31, %v349_v25 }
 0x56c   :  { %374 = vrot.lane.b32.xlu2 %v372_v32, %s1203_s28 }
 0x5c6   :  { %v375_v33 = vpop.permute.xlu2 %374 }
 0x5c7   :  { %v377_v34 = vadd.f32 %v1084_v29, %v375_v33 }
 0x5c9   :  { %379 = vrot.lane.b32.xlu0 %v377_v34, %s1201_s26 }
 0x63b   :  { %v380_v35 = vpop.permute.xlu0 %379 }
 0x63c   :  { %383 = vst.msk [vmem:[#allocation3] sm:$0x1] %vm382_vm11, %v380_v35  ;;  %1041 = vmatmul.msk.f32.vlgmr.msra.gmra.mxu1 %vm186_vm1, %v380_v35 }
 0x63d   :  { %385 = vst.msk [vmem:[#allocation3 + $0x7] sm:$0x2] %vm384_vm12, %v380_v35 }
 0x6b9   :  { %v405_v36 = vpop.f32.mrf.mxu1 }
 0x6ba   :  { %v428_v37 = vadd.f32 %v405_v36, %v1292_v4  ;;  %v408_v40 = vadd.f32 %v405_v36, %v257_v39 }
 0x6bc   :  { %430 = vrot.lane.b32.xlu1 %v428_v37, %s1201_s26  ;;  %v1042_v41 = vmul.f32 -1.442695, %v408_v40 }
 0x6be   :  { %1085 = vpow2.f32 %v1042_v41 }
 0x6c4   :  { %v1086_v42 = vpop.eup %1085 }
 0x6c5   :  { %v412_v43 = vadd.f32 1.0, %v1086_v42 }
 0x6c7   :  { %1087 = vrcp.f32 %v412_v43  ;;  %v424_v49 = vand.u32 2147483648, %v412_v43  ;;  %vm418_vm14 = vweird.f32 %v412_v43  ;;  %v422_v50 = vand.u32 2147483647, %v412_v43 }
 0x6c9   :  { %v425_v52 = vor.u32 1.1754944e-38, %v424_v49  ;;  %vm423_vm0 = vcmp.eq.f32.partialorder %v422_v50, 8.507059e+37 }
 0x6cd   :  { %v1088_v44 = vpop.eup %1087 }
 0x6ce   :  { %v414_v45 = vmul.f32 %v1088_v44, %v412_v43  ;;  %vm419_vm13 = vweird.f32 %v1088_v44 }
 0x6cf   :  { %vm420_vm15 = vmor %vm418_vm14, %vm419_vm13 }
 0x6d0   :  { %v415_v46 = vsub.f32 1.0, %v414_v45 }
 0x6d2   :  { %v416_v47 = vmul.f32 %v1088_v44, %v415_v46 }
 0x6d4   :  { %v417_v48 = vadd.f32 %v1088_v44, %v416_v47 }
 0x6d6   :  { %v421_v51 = vsel %vm420_vm15, %v1088_v44, %v417_v48 }
 0x6d7   :  { %v426_v54 = vsel %vm423_vm0, %v425_v52, %v421_v51 }
 0x72e   :  { %v431_v53 = vpop.permute.xlu1 %430 }
 0x72f   :  { %v433_v55 = vmul.f32 %v431_v53, %v426_v54 }
 0x731   :  { %435 = vrot.lane.b32.xlu2 %v433_v55, %s1201_s26 }
 0x78b   :  { %v436_v56 = vpop.permute.xlu2 %435 }
 0x78c   :  { %v438_v57 = vadd.f32 %v436_v56, %v257_v39 }
 0x78e   :  { %1089 = vtanh.f32 %v438_v57 }
 0x794   :  { %v1090_v58 = vpop.eup %1089 }
 0x795   :  { %v440_v59 = vsub.f32 %v377_v34, %v1090_v58  ;;  %v260_v34 = vld [vmem:[#allocation2 + $0x6] sm:$0x3] }
 0x796   :  { %v261_v35 = vadd.f32 %v260_v34, %v1297_v8 }
 0x797   :  { %442 = vrot.lane.b32.xlu0 %v440_v59, %s1202_s27 }
 0x809   :  { %v443_v60 = vpop.permute.xlu0 %442 }
 0x80a   :  { %v445_v61 = vmul.f32 %v443_v60, %v426_v54 }
 0x80c   :  { %447 = vrot.lane.b32.xlu1 %v445_v61, %s1203_s28 }
 0x87e   :  { %v448_v62 = vpop.permute.xlu1 %447 }
 0x87f   :  { %v450_v63 = vadd.f32 %v1090_v58, %v448_v62 }
 0x881   :  { %452 = vrot.lane.b32.xlu2 %v450_v63, %s1201_s26 }
 0x8db   :  { %v453_v0 = vpop.permute.xlu2 %452 }
 0x8dc   :  { %455 = vst.msk [vmem:[#allocation3 + $0x1] sm:$0x1] %vm382_vm11, %v453_v0  ;;  %1043 = vmatmul.msk.f32.vlgmr.msra.gmra.mxu2 %vm186_vm1, %v453_v0 }
 0x8dd   :  { %456 = vst.msk [vmem:[#allocation3 + $0x8] sm:$0x2] %vm384_vm12, %v453_v0 }
 0x95f   :  { %v476_v1 = vpop.f32.mrf.mxu2 }
 0x960   :  { %v499_v2 = vadd.f32 %v476_v1, %v1292_v4  ;;  %v479_v6 = vadd.f32 %v476_v1, %v259_v5 }
 0x962   :  { %501 = vrot.lane.b32.xlu0 %v499_v2, %s1201_s26  ;;  %v1044_v7 = vmul.f32 -1.442695, %v479_v6 }
 0x964   :  { %1091 = vpow2.f32 %v1044_v7 }
 0x96a   :  { %v1092_v9 = vpop.eup %1091 }
 0x96b   :  { %v483_v10 = vadd.f32 1.0, %v1092_v9 }
 0x96d   :  { %1093 = vrcp.f32 %v483_v10  ;;  %v495_v16 = vand.u32 2147483648, %v483_v10  ;;  %vm489_vm3 = vweird.f32 %v483_v10  ;;  %v493_v17 = vand.u32 2147483647, %v483_v10 }
 0x96f   :  { %v496_v19 = vor.u32 1.1754944e-38, %v495_v16  ;;  %vm494_vm5 = vcmp.eq.f32.partialorder %v493_v17, 8.507059e+37 }
 0x973   :  { %v1094_v11 = vpop.eup %1093 }
 0x974   :  { %v485_v12 = vmul.f32 %v1094_v11, %v483_v10  ;;  %vm490_vm2 = vweird.f32 %v1094_v11 }
 0x975   :  { %vm491_vm4 = vmor %vm489_vm3, %vm490_vm2 }
 0x976   :  { %v486_v13 = vsub.f32 1.0, %v485_v12 }
 0x978   :  { %v487_v14 = vmul.f32 %v1094_v11, %v486_v13 }
 0x97a   :  { %v488_v15 = vadd.f32 %v1094_v11, %v487_v14 }
 0x97c   :  { %v492_v18 = vsel %vm491_vm4, %v1094_v11, %v488_v15 }
 0x97d   :  { %v497_v21 = vsel %vm494_vm5, %v496_v19, %v492_v18 }
 0x9d4   :  { %v502_v20 = vpop.permute.xlu0 %501 }
 0x9d5   :  { %v504_v22 = vmul.f32 %v502_v20, %v497_v21 }
 0x9d7   :  { %506 = vrot.lane.b32.xlu1 %v504_v22, %s1201_s26 }
 0xa49   :  { %v507_v23 = vpop.permute.xlu1 %506 }
 0xa4a   :  { %v509_v24 = vadd.f32 %v507_v23, %v259_v5 }
 0xa4c   :  { %1095 = vtanh.f32 %v509_v24 }
 0xa52   :  { %v1096_v25 = vpop.eup %1095 }
 0xa53   :  { %v511_v26 = vsub.f32 %v450_v63, %v1096_v25  ;;  %v262_v63 = vld [vmem:[#allocation2 + $0x8] sm:$0x3] }
 0xa54   :  { %v263_v0 = vadd.f32 %v262_v63, %v1297_v8 }
 0xa55   :  { %513 = vrot.lane.b32.xlu2 %v511_v26, %s1202_s27 }
 0xaaf   :  { %v514_v27 = vpop.permute.xlu2 %513 }
 0xab0   :  { %v516_v28 = vmul.f32 %v514_v27, %v497_v21 }
 0xab2   :  { %518 = vrot.lane.b32.xlu0 %v516_v28, %s1203_s28 }
 0xb24   :  { %v519_v29 = vpop.permute.xlu0 %518 }
 0xb25   :  { %v521_v30 = vadd.f32 %v1096_v25, %v519_v29 }
 0xb27   :  { %523 = vrot.lane.b32.xlu1 %v521_v30, %s1201_s26 }
 0xb99   :  { %v524_v31 = vpop.permute.xlu1 %523 }
 0xb9a   :  { %526 = vst.msk [vmem:[#allocation3 + $0x2] sm:$0x1] %vm382_vm11, %v524_v31  ;;  %1045 = vmatmul.msk.f32.vlgmr.msra.gmra.mxu3 %vm186_vm1, %v524_v31 }
 0xb9b   :  { %527 = vst.msk [vmem:[#allocation3 + $0x9] sm:$0x2] %vm384_vm12, %v524_v31 }
 0xc1d   :  { %v547_v32 = vpop.f32.mrf.mxu3 }
 0xc1e   :  { %v570_v33 = vadd.f32 %v547_v32, %v1292_v4  ;;  %v550_v36 = vadd.f32 %v547_v32, %v261_v35 }
 0xc20   :  { %572 = vrot.lane.b32.xlu2 %v570_v33, %s1201_s26  ;;  %v1046_v37 = vmul.f32 -1.442695, %v550_v36 }
 0xc22   :  { %1097 = vpow2.f32 %v1046_v37 }
 0xc28   :  { %v1098_v38 = vpop.eup %1097 }
 0xc29   :  { %v554_v39 = vadd.f32 1.0, %v1098_v38 }
 0xc2b   :  { %1099 = vrcp.f32 %v554_v39  ;;  %v566_v45 = vand.u32 2147483648, %v554_v39  ;;  %vm560_vm7 = vweird.f32 %v554_v39  ;;  %v564_v46 = vand.u32 2147483647, %v554_v39 }
 0xc2d   :  { %v567_v48 = vor.u32 1.1754944e-38, %v566_v45  ;;  %vm565_vm9 = vcmp.eq.f32.partialorder %v564_v46, 8.507059e+37 }
 0xc31   :  { %v1100_v40 = vpop.eup %1099 }
 0xc32   :  { %v556_v41 = vmul.f32 %v1100_v40, %v554_v39  ;;  %vm561_vm6 = vweird.f32 %v1100_v40 }
 0xc33   :  { %vm562_vm8 = vmor %vm560_vm7, %vm561_vm6 }
 0xc34   :  { %v557_v42 = vsub.f32 1.0, %v556_v41 }
 0xc36   :  { %v558_v43 = vmul.f32 %v1100_v40, %v557_v42 }
 0xc38   :  { %v559_v44 = vadd.f32 %v1100_v40, %v558_v43 }
 0xc3a   :  { %v563_v47 = vsel %vm562_vm8, %v1100_v40, %v559_v44 }
 0xc3b   :  { %v568_v50 = vsel %vm565_vm9, %v567_v48, %v563_v47 }
 0xc7a   :  { %v573_v49 = vpop.permute.xlu2 %572 }
 0xc7b   :  { %v575_v51 = vmul.f32 %v573_v49, %v568_v50 }
 0xc7d   :  { %577 = vrot.lane.b32.xlu0 %v575_v51, %s1201_s26 }
 0xcef   :  { %v578_v52 = vpop.permute.xlu0 %577 }
 0xcf0   :  { %v580_v53 = vadd.f32 %v578_v52, %v261_v35 }
 0xcf2   :  { %1101 = vtanh.f32 %v580_v53 }
 0xcf8   :  { %v1102_v54 = vpop.eup %1101 }
 0xcf9   :  { %v582_v55 = vsub.f32 %v521_v30, %v1102_v54  ;;  %v264_v30 = vld [vmem:[#allocation2 + $0xa] sm:$0x3] }
 0xcfa   :  { %v265_v31 = vadd.f32 %v264_v30, %v1297_v8 }
 0xcfb   :  { %584 = vrot.lane.b32.xlu1 %v582_v55, %s1202_s27 }
 0xd6d   :  { %v585_v56 = vpop.permute.xlu1 %584 }
 0xd6e   :  { %v587_v57 = vmul.f32 %v585_v56, %v568_v50 }
 0xd70   :  { %589 = vrot.lane.b32.xlu2 %v587_v57, %s1203_s28 }
 0xdca   :  { %v590_v58 = vpop.permute.xlu2 %589 }
 0xdcb   :  { %v592_v59 = vadd.f32 %v1102_v54, %v590_v58 }
 0xdcd   :  { %594 = vrot.lane.b32.xlu0 %v592_v59, %s1201_s26 }
 0xe3f   :  { %v595_v60 = vpop.permute.xlu0 %594 }
 0xe40   :  { %597 = vst.msk [vmem:[#allocation3 + $0x3] sm:$0x1] %vm382_vm11, %v595_v60  ;;  %1047 = vmatmul.msk.f32.vlgmr.msrb.gmra.mxu0 %vm186_vm1, %v595_v60 }
 0xe41   :  { %598 = vst.msk [vmem:[#allocation3 + $0xa] sm:$0x2] %vm384_vm12, %v595_v60 }
 0xebd   :  { %v618_v61 = vpop.f32.mrf.mxu0 }
 0xebe   :  { %v641_v62 = vadd.f32 %v618_v61, %v1292_v4  ;;  %v621_v1 = vadd.f32 %v618_v61, %v263_v0 }
 0xec0   :  { %643 = vrot.lane.b32.xlu1 %v641_v62, %s1201_s26  ;;  %v1048_v2 = vmul.f32 -1.442695, %v621_v1 }
 0xec2   :  { %1103 = vpow2.f32 %v1048_v2 }
 0xec8   :  { %v1104_v3 = vpop.eup %1103 }
 0xec9   :  { %v625_v5 = vadd.f32 1.0, %v1104_v3 }
 0xecb   :  { %1105 = vrcp.f32 %v625_v5  ;;  %v637_v12 = vand.u32 2147483648, %v625_v5  ;;  %vm631_vm13 = vweird.f32 %v625_v5  ;;  %v635_v13 = vand.u32 2147483647, %v625_v5 }
 0xecd   :  { %v638_v15 = vor.u32 1.1754944e-38, %v637_v12  ;;  %vm636_vm15 = vcmp.eq.f32.partialorder %v635_v13, 8.507059e+37 }
 0xed1   :  { %v1106_v6 = vpop.eup %1105 }
 0xed2   :  { %v627_v7 = vmul.f32 %v1106_v6, %v625_v5  ;;  %vm632_vm10 = vweird.f32 %v1106_v6 }
 0xed3   :  { %vm633_vm14 = vmor %vm631_vm13, %vm632_vm10 }
 0xed4   :  { %v628_v9 = vsub.f32 1.0, %v627_v7 }
 0xed6   :  { %v629_v10 = vmul.f32 %v1106_v6, %v628_v9 }
 0xed8   :  { %v630_v11 = vadd.f32 %v1106_v6, %v629_v10 }
 0xeda   :  { %v634_v14 = vsel %vm633_vm14, %v1106_v6, %v630_v11 }
 0xedb   :  { %v639_v17 = vsel %vm636_vm15, %v638_v15, %v634_v14 }
 0xf32   :  { %v644_v16 = vpop.permute.xlu1 %643 }
 0xf33   :  { %v646_v18 = vmul.f32 %v644_v16, %v639_v17 }
 0xf35   :  { %648 = vrot.lane.b32.xlu2 %v646_v18, %s1201_s26 }
 0xf8f   :  { %v649_v19 = vpop.permute.xlu2 %648 }
 0xf90   :  { %v651_v20 = vadd.f32 %v649_v19, %v263_v0 }
 0xf92   :  { %1107 = vtanh.f32 %v651_v20 }
 0xf98   :  { %v1108_v21 = vpop.eup %1107 }
 0xf99   :  { %v653_v22 = vsub.f32 %v592_v59, %v1108_v21  ;;  %v266_v59 = vld [vmem:[#allocation2 + $0xc] sm:$0x3] }
 0xf9a   :  { %v267_v60 = vadd.f32 %v266_v59, %v1297_v8  ;;  %v67_v59 = vld [vmem:[#allocation8 + $0xf8] sm:$0xff] }
 0xf9b   :  { %655 = vrot.lane.b32.xlu0 %v653_v22, %s1202_s27 }
0x100d   :  { %v656_v23 = vpop.permute.xlu0 %655 }
0x100e   :  { %v658_v24 = vmul.f32 %v656_v23, %v639_v17 }
0x1010   :  { %660 = vrot.lane.b32.xlu1 %v658_v24, %s1203_s28 }
0x1082   :  { %v661_v25 = vpop.permute.xlu1 %660 }
0x1083   :  { %v663_v26 = vadd.f32 %v1108_v21, %v661_v25 }
0x1085   :  { %665 = vrot.lane.b32.xlu2 %v663_v26, %s1201_s26 }
0x10df   :  { %v666_v27 = vpop.permute.xlu2 %665 }
0x10e0   :  { %668 = vst.msk [vmem:[#allocation3 + $0x4] sm:$0x1] %vm382_vm11, %v666_v27  ;;  %1049 = vmatmul.msk.f32.vlgmr.msrb.gmra.mxu1 %vm186_vm1, %v666_v27 }
0x10e1   :  { %669 = vst.msk [vmem:[#allocation3 + $0xb] sm:$0x2] %vm384_vm12, %v666_v27 }
0x115d   :  { %v689_v28 = vpop.f32.mrf.mxu1 }
0x115e   :  { %v712_v29 = vadd.f32 %v689_v28, %v1292_v4  ;;  %v692_v32 = vadd.f32 %v689_v28, %v265_v31 }
0x1160   :  { %714 = vrot.lane.b32.xlu0 %v712_v29, %s1201_s26  ;;  %v1050_v33 = vmul.f32 -1.442695, %v692_v32 }
0x1162   :  { %1109 = vpow2.f32 %v1050_v33 }
0x1168   :  { %v1110_v34 = vpop.eup %1109 }
0x1169   :  { %v696_v35 = vadd.f32 1.0, %v1110_v34 }
0x116b   :  { %1111 = vrcp.f32 %v696_v35  ;;  %v708_v41 = vand.u32 2147483648, %v696_v35  ;;  %vm702_vm2 = vweird.f32 %v696_v35  ;;  %v706_v42 = vand.u32 2147483647, %v696_v35 }
0x116d   :  { %v709_v44 = vor.u32 1.1754944e-38, %v708_v41  ;;  %vm707_vm4 = vcmp.eq.f32.partialorder %v706_v42, 8.507059e+37 }
0x1171   :  { %v1112_v36 = vpop.eup %1111 }
0x1172   :  { %v698_v37 = vmul.f32 %v1112_v36, %v696_v35  ;;  %vm703_vm0 = vweird.f32 %v1112_v36 }
0x1173   :  { %vm704_vm3 = vmor %vm702_vm2, %vm703_vm0 }
0x1174   :  { %v699_v38 = vsub.f32 1.0, %v698_v37 }
0x1176   :  { %v700_v39 = vmul.f32 %v1112_v36, %v699_v38 }
0x1178   :  { %v701_v40 = vadd.f32 %v1112_v36, %v700_v39 }
0x117a   :  { %v705_v43 = vsel %vm704_vm3, %v1112_v36, %v701_v40 }
0x117b   :  { %v710_v46 = vsel %vm707_vm4, %v709_v44, %v705_v43 }
0x11d2   :  { %v715_v45 = vpop.permute.xlu0 %714 }
0x11d3   :  { %v717_v47 = vmul.f32 %v715_v45, %v710_v46 }
0x11d5   :  { %719 = vrot.lane.b32.xlu1 %v717_v47, %s1201_s26 }
0x1247   :  { %v720_v48 = vpop.permute.xlu1 %719 }
0x1248   :  { %v722_v49 = vadd.f32 %v720_v48, %v265_v31 }
0x124a   :  { %1113 = vtanh.f32 %v722_v49 }
0x1250   :  { %v1114_v50 = vpop.eup %1113 }
0x1251   :  { %v724_v51 = vsub.f32 %v663_v26, %v1114_v50  ;;  %v268_v26 = vld [vmem:[#allocation2 + $0xe] sm:$0x3] }
0x1252   :  { %v269_v27 = vadd.f32 %v268_v26, %v1297_v8 }
0x1253   :  { %726 = vrot.lane.b32.xlu2 %v724_v51, %s1202_s27  ;;  %v64_v51 = vld [vmem:[#allocation8 + $0xe0] sm:$0xff] }
0x12ad   :  { %v727_v52 = vpop.permute.xlu2 %726 }
0x12ae   :  { %v729_v53 = vmul.f32 %v727_v52, %v710_v46  ;;  %v63_v52 = vld [vmem:[#allocation8 + $0xd8] sm:$0xff] }
0x12b0   :  { %731 = vrot.lane.b32.xlu0 %v729_v53, %s1203_s28  ;;  %v62_v53 = vld [vmem:[#allocation8 + $0xd0] sm:$0xff] }
0x1322   :  { %v732_v54 = vpop.permute.xlu0 %731 }
0x1323   :  { %v734_v55 = vadd.f32 %v1114_v50, %v732_v54  ;;  %v65_v50 = vld [vmem:[#allocation8 + $0xe8] sm:$0xff] }
0x1324   :  { %904 = vmatpush.msra.mxu0 %v65_v50 }
0x1325   :  { %736 = vrot.lane.b32.xlu1 %v734_v55, %s1201_s26 }
0x1326   :  { %905 = vmatpush.msra.mxu0 %v64_v51 }
0x1328   :  { %906 = vmatpush.msra.mxu0 %v63_v52 }
0x132a   :  { %907 = vmatpush.msra.mxu0 %v62_v53 }
0x1397   :  { %v737_v56 = vpop.permute.xlu1 %736 }
0x1398   :  { %739 = vst.msk [vmem:[#allocation3 + $0x5] sm:$0x1] %vm382_vm11, %v737_v56  ;;  %1051 = vmatmul.msk.f32.vlgmr.msrb.gmra.mxu2 %vm186_vm1, %v737_v56 }
0x1399   :  { %740 = vst.msk [vmem:[#allocation3 + $0xc] sm:$0x2] %vm384_vm12, %v737_v56 }
0x141b   :  { %v760_v57 = vpop.f32.mrf.mxu2 }
0x141c   :  { %v783_v58 = vadd.f32 %v760_v57, %v1292_v4  ;;  %v763_v61 = vadd.f32 %v760_v57, %v267_v60  ;;  %v69_v57 = vld [vmem:[#allocation8 + $0x108] sm:$0xff] }
0x141d   :  { %936 = vmatpush.msra.mxu1 %v69_v57 }
0x141e   :  { %785 = vrot.lane.b32.xlu2 %v783_v58, %s1201_s26  ;;  %v1052_v62 = vmul.f32 -1.442695, %v763_v61  ;;  %v68_v58 = vld [vmem:[#allocation8 + $0x100] sm:$0xff]  ;;  %v1071_v61 = vld [vmem:[#allocation8 + $0x114] ss:$0 sm:$0xff] }
0x141f   :  { %937 = vmatpush.msra.mxu1 %v68_v58 }
0x1420   :  { %1115 = vpow2.f32 %v1052_v62 }
0x1421   :  { %938 = vmatpush.msra.mxu1 %v67_v59 }
0x1426   :  { %v1116_v63 = vpop.eup %1115 }
0x1427   :  { %v767_v0 = vadd.f32 1.0, %v1116_v63 }
0x1429   :  { %1117 = vrcp.f32 %v767_v0  ;;  %v779_v7 = vand.u32 2147483648, %v767_v0  ;;  %vm773_vm6 = vweird.f32 %v767_v0  ;;  %v777_v9 = vand.u32 2147483647, %v767_v0 }
0x142b   :  { %v780_v11 = vor.u32 1.1754944e-38, %v779_v7  ;;  %vm778_vm8 = vcmp.eq.f32.partialorder %v777_v9, 8.507059e+37 }
0x142f   :  { %v1118_v1 = vpop.eup %1117 }
0x1430   :  { %v769_v2 = vmul.f32 %v1118_v1, %v767_v0  ;;  %vm774_vm5 = vweird.f32 %v1118_v1 }
0x1431   :  { %vm775_vm7 = vmor %vm773_vm6, %vm774_vm5 }
0x1432   :  { %v770_v3 = vsub.f32 1.0, %v769_v2 }
0x1434   :  { %v771_v5 = vmul.f32 %v1118_v1, %v770_v3 }
0x1436   :  { %v772_v6 = vadd.f32 %v1118_v1, %v771_v5  ;;  %v1072_v5 = vld [vmem:[#allocation8 + $0x115] ss:$0 sm:$0xff] }
0x1438   :  { %v776_v10 = vsel %vm775_vm7, %v1118_v1, %v772_v6 }
0x1439   :  { %v781_v13 = vsel %vm778_vm8, %v780_v11, %v776_v10 }
0x1478   :  { %v786_v12 = vpop.permute.xlu2 %785 }
0x1479   :  { %v788_v14 = vmul.f32 %v786_v12, %v781_v13 }
0x147b   :  { %790 = vrot.lane.b32.xlu0 %v788_v14, %s1201_s26 }
0x14ed   :  { %v791_v15 = vpop.permute.xlu0 %790 }
0x14ee   :  { %v793_v16 = vadd.f32 %v791_v15, %v267_v60  ;;  %v66_v60 = vld [vmem:[#allocation8 + $0xf0] sm:$0xff] }
0x14ef   :  { %939 = vmatpush.msra.mxu1 %v66_v60 }
0x14f0   :  { %1119 = vtanh.f32 %v793_v16 }
0x14f6   :  { %v1120_v17 = vpop.eup %1119 }
0x14f7   :  { %v795_v18 = vsub.f32 %v734_v55, %v1120_v17 }
0x14f9   :  { %797 = vrot.lane.b32.xlu1 %v795_v18, %s1202_s27 }
0x156b   :  { %v798_v19 = vpop.permute.xlu1 %797 }
0x156c   :  { %v800_v20 = vmul.f32 %v798_v19, %v781_v13 }
0x156e   :  { %802 = vrot.lane.b32.xlu2 %v800_v20, %s1203_s28 }
0x15c8   :  { %v803_v21 = vpop.permute.xlu2 %802 }
0x15c9   :  { %v805_v22 = vadd.f32 %v1120_v17, %v803_v21 }
0x15cb   :  { %807 = vrot.lane.b32.xlu0 %v805_v22, %s1201_s26 }
0x163d   :  { %v808_v23 = vpop.permute.xlu0 %807 }
0x163e   :  { %810 = vst.msk [vmem:[#allocation3 + $0x6] sm:$0x1] %vm382_vm11, %v808_v23  ;;  %1053 = vmatmul.msk.f32.vlgmr.msrb.gmra.mxu3 %vm186_vm1, %v808_v23 }
0x163f   :  { %811 = vst.msk [vmem:[#allocation3 + $0xd] sm:$0x2] %vm384_vm12, %v808_v23 }
0x16c1   :  { %v831_v24 = vpop.f32.mrf.mxu3 }
0x16c2   :  { %v854_v25 = vadd.f32 %v831_v24, %v1292_v4  ;;  %v834_v28 = vadd.f32 %v831_v24, %v269_v27 }
0x16c4   :  { %856 = vrot.lane.b32.xlu1 %v854_v25, %s1201_s26  ;;  %v1054_v29 = vmul.f32 -1.442695, %v834_v28 }
0x16c6   :  { %1121 = vpow2.f32 %v1054_v29 }
0x16cc   :  { %v1122_v30 = vpop.eup %1121 }
0x16cd   :  { %v838_v31 = vadd.f32 1.0, %v1122_v30 }
0x16cf   :  { %1123 = vrcp.f32 %v838_v31  ;;  %v850_v37 = vand.u32 2147483648, %v838_v31  ;;  %vm844_vm10 = vweird.f32 %v838_v31  ;;  %v848_v4 = vand.u32 2147483647, %v838_v31 }
0x16d1   :  { %v851_v39 = vor.u32 1.1754944e-38, %v850_v37  ;;  %vm849_vm14 = vcmp.eq.f32.partialorder %v848_v4, 8.507059e+37 }
0x16d5   :  { %v1124_v32 = vpop.eup %1123 }
0x16d6   :  { %v840_v33 = vmul.f32 %v1124_v32, %v838_v31  ;;  %vm845_vm9 = vweird.f32 %v1124_v32 }
0x16d7   :  { %vm846_vm13 = vmor %vm844_vm10, %vm845_vm9 }
0x16d8   :  { %v841_v34 = vsub.f32 1.0, %v840_v33 }
0x16da   :  { %v842_v35 = vmul.f32 %v1124_v32, %v841_v34 }
0x16dc   :  { %v843_v36 = vadd.f32 %v1124_v32, %v842_v35 }
0x16de   :  { %v847_v38 = vsel %vm846_vm13, %v1124_v32, %v843_v36 }
0x16df   :  { %v852_v40 = vsel %vm849_vm14, %v851_v39, %v847_v38 }
0x1736   :  { %v857_v8 = vpop.permute.xlu1 %856 }
0x1737   :  { %v859_v41 = vmul.f32 %v857_v8, %v852_v40 }
0x1739   :  { %861 = vrot.lane.b32.xlu2 %v859_v41, %s1201_s26 }
0x1793   :  { %v862_v42 = vpop.permute.xlu2 %861 }
0x1794   :  { %v864_v43 = vadd.f32 %v862_v42, %v269_v27 }
0x1796   :  { %1125 = vtanh.f32 %v864_v43 }
0x179c   :  { %v1126_v44 = vpop.eup %1125 }
0x179d   :  { %v866_v45 = vsub.f32 %v805_v22, %v1126_v44 }
0x179f   :  { %868 = vrot.lane.b32.xlu0 %v866_v45, %s1202_s27 }
0x1811   :  { %v869_v46 = vpop.permute.xlu0 %868 }
0x1812   :  { %v871_v47 = vmul.f32 %v869_v46, %v852_v40 }
0x1814   :  { %873 = vrot.lane.b32.xlu1 %v871_v47, %s1203_s28 }
0x1886   :  { %v874_v48 = vpop.permute.xlu1 %873 }
0x1887   :  { %v876_v49 = vadd.f32 %v1126_v44, %v874_v48 }
0x1889   :  { %878 = vrot.lane.b32.xlu2 %v876_v49, %s1201_s26 }
0x18e3   :  { %v879_v54 = vpop.permute.xlu2 %878 }
0x18e4   :  { %881 = vst.msk [vmem:[#allocation3 + $0x7] sm:$0x1] %vm382_vm11, %v879_v54  ;;  %vm947_vm11 = vcmask 523264  }
0x18e5   :  { %882 = vst.msk [vmem:[#allocation3 + $0xe] sm:$0x2] %vm384_vm12, %v879_v54 }
0x18eb   :  { %v883_v55 = vld [vmem:[#allocation3] sm:$0xff] }
0x18ec   :  { %1055 = vmatmul.msk.f32.vlgmr.msra.gmra.mxu0 %vm186_vm1, %v883_v55  ;;  %v884_v56 = vld [vmem:[#allocation3 + $0x8] sm:$0xff] }
0x18f4   :  { %1056 = vmatmul.msk.f32.gmra.mxu0 %vm186_vm1, %v884_v56 }
0x1969   :  { %v909_v62 = vpop.f32.mrf.mxu0 }
0x196a   :  { %v910_v63 = vadd.f32 %v1071_v61, %v909_v62 }
0x196c   :  { %1127 = vtanh.f32 %v910_v63 }
0x1971   :  { %v912_v0 = vpop.f32.mrf.mxu0 }
0x1972   :  { %v1128_v1 = vpop.eup %1127  ;;  %v913_v2 = vadd.f32 %v1071_v61, %v912_v0 }
0x1973   :  { %1057 = vmatmul.msk.f32.vlgmr.msra.gmra.mxu1 %vm186_vm1, %v1128_v1 }
0x1974   :  { %1129 = vtanh.f32 %v913_v2 }
0x197a   :  { %v1130_v3 = vpop.eup %1129 }
0x197b   :  { %1058 = vmatmul.msk.f32.gmra.mxu1 %vm186_vm1, %v1130_v3 }
0x19f0   :  { %v941_v6 = vpop.f32.mrf.mxu1 }
0x19f1   :  { %v942_v7 = vadd.f32 %v1072_v5, %v941_v6 }
0x19f3   :  { %948 = vst.msk [vmem:[#allocation9] sm:$0xff] %vm947_vm11, %v942_v7 }
0x19f8   :  { %v944_v9 = vpop.f32.mrf.mxu1 }
0x19f9   :  { %v945_v10 = vadd.f32 %v1072_v5, %v944_v9 }
0x19fb   :  { %950 = vst.msk [vmem:[#allocation9 + $0x8] sm:$0xff] %vm947_vm11, %v945_v10 }
0x19fc   :  { %963 = dma.vmem_to_hbm [thread:$0]  %s956_s30, 256, %s958_s6, [#allocation6], %s1199_s21, %s1199_s21, %s1200_s22  }
0x19fd   :  { %1195 = dma.done.wait [#allocation6], 256  }
0x19fe   :  { %1196 = vsyncadd [#allocation6], 4294967040 }
0x19ff   :  { %968 = vsyncpa [#allocation5], 1 }
0x1a00   :  { %969 = vsyncpa [#allocation6], 1 }
0x1a01   :  { %970 = vsyncpa [#allocation7], 1 }

</bundles_post_ra>
